<compile_context>
chip_gen: v6e
topology: v6e:2x2x1
jax: 0.10.0
libtpu: 0.0.40
codegen_flags: <defaults>
</compile_context>

<pallas_src>
import jax
import jax.numpy as jnp
from jax.experimental import pallas as pl
from jax.experimental.pallas import tpu as pltpu


# Below this many f32 elements (~8 MiB of input traffic) pallas_call launch +
# pipeline warm-up dominates; let XLA fuse the FMA instead.
_SMALL_INPUT_ELEMS = 2 * 1024 * 1024

# Lane width of the flattened 2-D view: a large multiple of 128 so stores are
# always lane-dense / unmasked, independent of the caller's original last dim.
_LANE_COLS = 1024

# Upper bound on the row tile: 1024 x 1024 f32 = 4 MiB / tile, so the
# double-buffered (input + output) working set is ~16 MiB -- well under v7x's
# 64 MiB per-TensorCore VMEM and easily raised past v5e's 16 MiB scoped default.
_MAX_ROW_TILE = 1024


def _linreg_kernel(x_ref, w_ref, b_ref, o_ref):
    # w / b are (1,1) scalars in SMEM; the fused multiply-add runs on the VPU
    # over a lane-dense VMEM tile.  DMA (HBM bandwidth) is the bottleneck, so
    # no further work on the compute body or pipeline depth is warranted.
    o_ref[...] = x_ref[...] * w_ref[0, 0] + b_ref[0, 0]


def _choose_row_tile(rows: int) -> int:
    # Largest row tile (multiple of 8, <= _MAX_ROW_TILE) that still yields
    # >= 8 grid blocks so v7x megacore can balance its two TensorCores.
    tr = _MAX_ROW_TILE
    while tr > 8 and rows // tr < 8:
        tr //= 2
    return tr


def _linreg_pallas_2d(x2: jax.Array, w2: jax.Array, b2: jax.Array) -> jax.Array:
    """Tiled elementwise y = x*w + b on a lane-dense (rows, 1024) f32 view."""
    rows, cols = x2.shape
    tr = _choose_row_tile(rows)
    grid = (pl.cdiv(rows, tr),)

    tile_bytes = tr * cols * x2.dtype.itemsize
    # Double-buffered input + output tiles plus slack; capped at 48 MiB so the
    # same code path is safe on v7x (64 MiB per TC) while still exceeding the
    # v5e/v6e scoped defaults when tiles grow.
    vmem_bytes = min(48 * 1024 * 1024,
                     max(8 * 1024 * 1024, 4 * tile_bytes + (4 << 20)))

    return pl.pallas_call(
        _linreg_kernel,
        out_shape=jax.ShapeDtypeStruct((rows, cols), x2.dtype),
        grid_spec=pl.GridSpec(
            grid=grid,
            in_specs=[
                pl.BlockSpec((tr, cols), lambda i: (i, 0)),
                pl.BlockSpec((1, 1), lambda i: (0, 0),
                             memory_space=pltpu.SMEM),
                pl.BlockSpec((1, 1), lambda i: (0, 0),
                             memory_space=pltpu.SMEM),
            ],
            out_specs=pl.BlockSpec((tr, cols), lambda i: (i, 0)),
        ),
        compiler_params=pltpu.CompilerParams(
            dimension_semantics=("parallel",),
            vmem_limit_bytes=vmem_bytes,
        ),
        cost_estimate=pl.CostEstimate(
            flops=2 * rows * cols,
            bytes_accessed=2 * rows * cols * x2.dtype.itemsize,
            transcendentals=0,
        ),
    )(x2, w2, b2)


def linreg_forward(x: jax.Array, w: jax.Array, b: jax.Array) -> jax.Array:
    """Pallas equivalent of LinRegModel.forward: x * weights + bias.

    x: float32 array of any shape.
    w, b: float32 scalar parameters (shape (1,), as in the nn.Parameter).
    """
    x = jnp.asarray(x, jnp.float32)
    w = jnp.asarray(w, jnp.float32).reshape(())
    b = jnp.asarray(b, jnp.float32).reshape(())

    # Small / medium inputs: XLA's fused FMA is already at roofline and avoids
    # the pallas_call fixed overhead.
    if x.size < _SMALL_INPUT_ELEMS:
        return x * w + b

    orig_shape = x.shape
    flat = x.reshape(-1)            # elementwise op: the layout is ours to pick
    n = flat.shape[0]
    rows = n // _LANE_COLS
    main_elems = rows * _LANE_COLS

    w2 = w.reshape(1, 1)
    b2 = b.reshape(1, 1)

    y_main = _linreg_pallas_2d(
        flat[:main_elems].reshape(rows, _LANE_COLS), w2, b2
    ).reshape(-1)

    tail = n - main_elems
    if tail:
        # Ragged tail (< one 1024-lane row): cheaper on the XLA path than a
        # masked Pallas block; nothing is dropped.
        y_tail = flat[main_elems:] * w + b
        y_flat = jnp.concatenate([y_main, y_tail])
    else:
        y_flat = y_main
    return y_flat.reshape(orig_shape)


if __name__ == "__main__":
    key = jax.random.PRNGKey(0)
    kw, kb, kx = jax.random.split(key, 3)

    # Mirror torch.rand(1): uniform [0, 1) scalar parameters.
    w = jax.random.uniform(kw, (1,), dtype=jnp.float32)
    b = jax.random.uniform(kb, (1,), dtype=jnp.float32)

    # 1) Canonical LinRegModel input from the workflow notebook:
    #    X = torch.arange(0, 1, 0.02).unsqueeze(1) -> (50, 1).
    #    This correctly takes the fused-XLA fast path.
    x_small = jnp.arange(0.0, 1.0, 0.02, dtype=jnp.float32).reshape(-1, 1)
    y_small = linreg_forward(x_small, w, b)
    jax.block_until_ready(y_small)
    ref_small = x_small * w + b
    assert y_small.shape == ref_small.shape, "shape mismatch vs reference (small)"
    assert jnp.allclose(y_small, ref_small, atol=1e-6), "mismatch vs reference (small)"

    # 2) A larger batch that exercises the tiled Pallas path (flatten ->
    #    lane-dense (rows, 1024) tiles + ragged XLA tail): 2600 x 963 f32,
    #    ~2.5M elements (~10 MiB).
    x_big = jax.random.normal(kx, (2600, 963), dtype=jnp.float32)
    y_big = linreg_forward(x_big, w, b)
    jax.block_until_ready(y_big)
    ref_big = x_big * w + b
    assert y_big.shape == ref_big.shape, "shape mismatch vs reference (big)"
    assert jnp.allclose(y_big, ref_big, atol=1e-6), "mismatch vs reference (big)"

    print("KERNEL_OK")
</pallas_src>

<mosaic_0001>
module attributes {stable_mosaic.version = 11 : i64} {
  func.func @_linreg_kernel(%arg0: i32, %arg1: memref<256x1024xf32, #tpu.memory_space<vmem>>, %arg2: memref<1x1xf32, #tpu.memory_space<smem>>, %arg3: memref<1x1xf32, #tpu.memory_space<smem>>, %arg4: memref<256x1024xf32, #tpu.memory_space<vmem>>) attributes {dimension_semantics = [#tpu.dimension_semantics<parallel>], iteration_bounds = array<i64: 10>, scalar_prefetch = 0 : i64, scratch_operands = 0 : i64, tpu.core_type = #tpu.core_type<tc>, window_params = [{transform_indices = @transform_0, window_bounds = array<i64: 256, 1024>}, {transform_indices = @transform_1, window_bounds = array<i64: 1, 1>}, {transform_indices = @transform_2, window_bounds = array<i64: 1, 1>}, {transform_indices = @transform_3, window_bounds = array<i64: 256, 1024>}]} {
    %c0 = arith.constant 0 : index
    %c0_0 = arith.constant 0 : index
    %0 = vector.load %arg1[%c0, %c0_0] : memref<256x1024xf32, #tpu.memory_space<vmem>>, vector<256x1024xf32>
    %c0_1 = arith.constant 0 : index
    %c0_2 = arith.constant 0 : index
    %1 = memref.load %arg2[%c0_1, %c0_2] : memref<1x1xf32, #tpu.memory_space<smem>>
    %2 = vector.broadcast %1 : f32 to vector<256x1024xf32>
    %3 = arith.mulf %0, %2 : vector<256x1024xf32>
    %c0_3 = arith.constant 0 : index
    %c0_4 = arith.constant 0 : index
    %4 = memref.load %arg3[%c0_3, %c0_4] : memref<1x1xf32, #tpu.memory_space<smem>>
    %5 = vector.broadcast %4 : f32 to vector<256x1024xf32>
    %6 = arith.addf %3, %5 : vector<256x1024xf32>
    %c0_5 = arith.constant 0 : index
    %c0_6 = arith.constant 0 : index
    %7 = vector.load %arg4[%c0_5, %c0_6] : memref<256x1024xf32, #tpu.memory_space<vmem>>, vector<256x1024xf32>
    tpu.vector_store %arg4[%c0_5, %c0_6], %6 {strides = array<i32>} : memref<256x1024xf32, #tpu.memory_space<vmem>>, vector<256x1024xf32>,
    return
  }
  func.func @transform_0(%arg0: i32) -> (i32, i32) {
    %c0_i32 = arith.constant 0 : i32
    %c0_i32_0 = arith.constant 0 : i32
    return %arg0, %c0_i32 : i32, i32
  }
  func.func @transform_1(%arg0: i32) -> (i32, i32) {
    %c0_i32 = arith.constant 0 : i32
    %c0_i32_0 = arith.constant 0 : i32
    %c0_i32_1 = arith.constant 0 : i32
    return %c0_i32, %c0_i32_0 : i32, i32
  }
  func.func @transform_2(%arg0: i32) -> (i32, i32) {
    %c0_i32 = arith.constant 0 : i32
    %c0_i32_0 = arith.constant 0 : i32
    %c0_i32_1 = arith.constant 0 : i32
    return %c0_i32, %c0_i32_0 : i32, i32
  }
  func.func @transform_3(%arg0: i32) -> (i32, i32) {
    %c0_i32 = arith.constant 0 : i32
    %c0_i32_0 = arith.constant 0 : i32
    return %arg0, %c0_i32 : i32, i32
  }
}

</mosaic_0001>

<bundles_post_ra>
// kernel: tpu_custom_call.1
= control target key start
LH: loop header
LB: loop body
LE: loop exit
PB: predicated region body
PF: predicated region fallthrough
CT: control target
= control target key end

     0   :  { %s2735_s0 = inlined_call_operand.hbm [shape: f32[2445,1024], index: 0, kind: input, shape index: {}]   ;;  %s2736_s1 = inlined_call_operand.<no memory space> [shape: f32[1,1], index: 1, kind: input, shape index: {}]   ;;  %s2737_s2 = inlined_call_operand.<no memory space> [shape: f32[1,1], index: 2, kind: input, shape index: {}]   ;;  %s2738_s3 = inlined_call_operand.hbm [shape: f32[2445,1024], index: 3, kind: output, shape index: {}]  }
   0x1   :  { %8 = sst [smem:[#allocation2]] %s2736_s1 }
   0x2   :  { %9 = sst [smem:[#allocation3]] %s2737_s2 }
   0x3   :  { %10 = vsyncpa [#allocation5], 0 }
   0x4   :  { %12 = vsyncpa [#allocation5 + $0x1], 0 }
   0x5   :  { %13 = vsyncpa [#allocation6], 0 }
   0x6   :  { %15 = vsyncpa [#allocation6 + $0x1], 0  ;;  %s1533_s16 = smov 0   ;;  %s1535_s17 = smov 0  }
   0x7   :  { %s1537_s18 = smov 0   ;;  %s1539_s19 = smov 0  }
   0x8 LB: > { %s1554_s1 = sadd.s32 4294967295, %s1499_s19   ;;  %s1334_s2 = sadd.s32 4294967294, %s1499_s19   ;;  %s1499_s19 = sphi %s1539_s19, %s2746_s19   ;;  %s1495_s18 = sphi %s1537_s18, %s2745_s18   ;;  %s1491_s17 = sphi %s1535_s17, %s2744_s17   ;;  %s1487_s16 = sphi %s1533_s16, %s2743_s16  }
   0x9   : > { %s1558_s20 = sadd.s32 1, %s1499_s19   ;;  %s28_s21 = sadd.s32 1, %s1495_s18 }
   0xa   : > { %s25_s22 = ssub.s32 %s1499_s19, %s1558_s20  ;;  %p35_p0 = scmp.ne.s32.totalorder %s1495_s18, %s1491_s17 }
   0xb   : > { %p26_p1 = scmp.eq.s32.totalorder %s25_s22, 0  ;;  %p36_p2 = scmp.eq.s32.totalorder %s1499_s19, 0 }
   0xc   : > { %p41_p3 = scmp.ne.s32.totalorder %s1491_s17, %s1487_s16  ;;  %p42_p4 = scmp.eq.s32.totalorder %s1554_s1, 0 }
   0xd   : > { %s1570_s23 = scalar_select %p26_p1, %s1495_s18, %s28_s21  }
   0xe   : > { %p37_p5 = por %p36_p2, %p35_p0  ;;  %p1572_p6 = por %p42_p4, %p41_p3 }
   0xf   : > { %p107_p7 = scmp.eq.s32.totalorder %s1554_s1, 9  ;;  %p113_p8 = scmp.eq.s32.totalorder %s1334_s2, 9 }
  0x10   : > { %p1336_p11 = scmp.ge.s32.totalorder %s1499_s19, 10 }
  0x11   : > { %p1577_p9 = por %p107_p7, %p35_p0  ;;  %p1581_p10 = por %p113_p8, %p41_p3 }
  0x12   : > { %135 = sbr.rel (%p1336_p11) target bundleno = 55 (0x37), region = 24 }
  0x13   : > { %s2741_s26 = scalar_select %p1581_p10, 1, 0 }
  0x17   : > { %138 = sbr.rel (!%p37_p5) target bundleno = 55 (0x37), region = 28  ;;  %s139_s27 = sand.u32 (%p37_p5), 1, %s1495_s18  }
  0x18   : > { %s1338_s28 = sshll.u32 (%p37_p5), %s1499_s19, 5  ;;  %s1337_s29 = sshll.u32 (%p37_p5), %s139_s27, 11 }
  0x19   : > { %s145_s30 = ssub.s32 (%p37_p5), 306, %s1338_s28  ;;  %s1591_s6 = scalar_lea.sflag (%p37_p5), [#allocation5], %s139_s27 }
  0x1a   : > { %p146_p12 = scmp.lt.s32.totalorder (%p37_p5), %s145_s30, 32  ;;  %s143_s7 = scalar_lea.vmem (%p37_p5), [#allocation4], %s1337_s29 }
  0x1c   : > { %s2748_s30 = smov (!%p146_p12, %s145_s30), 32 }
  0x1d   : > { %s1588_s4 = sshll.u32 %s2748_s30, 10 }
  0x1e   : > { %s151_s5 = ssub.s32 32768, %s1588_s4 }
  0x1f   : > { %152 = vsyncadd %s1591_s6, %s151_s5  ;;  %p1341_p13 = scmp.ne.s32.totalorder %s1588_s4, 0  ;;  %s1362_s8 = sshll.u32 %s1499_s19, 15 }
  0x20   : > { %s1599_s11 = scalar_lea.hbm %s2735_s0, %s1362_s8  ;;  %s158_s12 = sshll.u32 %s143_s7, 4  ;;  %s1601_s12 = int_to_ptr.vmem [resolvable:$true] %s158_s12 }
  0x21   : > { %s1409_s13 = scalar_lea.hbm %s1599_s11, %s1588_s4  ;;  %s1413_s2 = scalar_lea.hbm %s2735_s0, 313344 }
  0x22   : > { %p1410_p0 = scmp.ne.s32.totalorder %s1599_s11, %s1409_s13  ;;  %p1414_p3 = scmp.lt.s32.totalorder %s1599_s11, %s2735_s0 }
  0x23   : > { %p1415_p4 = scmp.lt.s32.totalorder %s1413_s2, %s1409_s13 }
  0x24   : > { %p1411_p1 = pnand %p1410_p0, %p1341_p13 }
  0x25   : > { %p1416_p5 = por %p1415_p4, %p1414_p3 }
  0x26   : > { %p1412_p2 = pneg %p1411_p1 }
  0x28   : > { %p1417_p7 = pnand %p1416_p5, %p1412_p2 }
  0x2a   : > { %1420 = shalt.err (!%p1417_p7)
}
  0x2b   : > { %s1421_s27 = scalar_lea.vmem %s1601_s12, %s1588_s4  ;;  %s1501_s28 = smov [#allocation4]  }
  0x2c   : > { %p1422_p8 = scmp.ne.s32.totalorder %s1601_s12, %s1421_s27  ;;  %s1425_s29 = sshll.u32 %s1501_s28, 4  ;;  %s1426_s29 = int_to_ptr.vmem [resolvable:$false] %s1425_s29 }
  0x2d   : > { %s1427_s30 = scalar_lea.vmem %s1426_s29, 65536  ;;  %p1428_p0 = scmp.lt.s32.totalorder %s1601_s12, %s1426_s29 }
  0x2e   : > { %p1423_p11 = pnand %p1422_p8, %p1341_p13  ;;  %p1429_p1 = scmp.lt.s32.totalorder %s1427_s30, %s1421_s27 }
  0x30   : > { %p1424_p12 = pneg %p1423_p11  ;;  %p1430_p10 = por %p1429_p1, %p1428_p0 }
  0x32   : > { %p1431_p3 = pnand %p1430_p10, %p1424_p12 }
  0x34   : > { %1434 = shalt.err (!%p1431_p3)
}
  0x35   : > { %s1502_s5 = smov 1024   ;;  %s1503_s7 = smov 64  }
  0x36   : > { %164 = dma.hbm_to_vmem [thread:$0]  (%p1341_p13), %s1599_s11, %s1588_s4, %s1601_s12, %s1591_s6, %s1502_s5, %s1502_s5, %s1503_s7  }
  0x37 PF: > { %p1346_p2 = scmp.ge.s32.totalorder %s1499_s19, 1  ;;  %p166_p4 = scmp.lt.s32.totalorder %s1499_s19, 11 }
  0x39   : > { %p167_p5 = pnand %p1346_p2, %p166_p4 }
  0x3a   : > { %s1630_s8 = sand.u32 (!%p167_p5), 1, %s1491_s17  }
  0x3b   : > { %170 = sbr.rel (%p167_p5) target bundleno = 256 (0x100), region = 32  ;;  %s1347_s9 = sshll.u32 (!%p167_p5), %s1630_s8, 11 }
  0x3c   : > { %s173_s10 = scalar_lea.sflag (!%p167_p5), [#allocation5], %s1630_s8  ;;  %s1636_s13 = scalar_lea.vmem (!%p167_p5), [#allocation4], %s1347_s9 }
  0x40   : > { %1478 = dma.done.wait (%p1572_p6), %s173_s10, 32768  }
  0x41   : > { %1480 = vsyncadd (%p1572_p6), %s173_s10, 4294934528  ;;  %s467_s4 = sld [smem:[#allocation2]]  ;;  %v211_v0 = vld [vmem:[%s1636_s13] sm:$0xff]  ;;  %v212_v2 = vld [vmem:[%s1636_s13 + $0x8] sm:$0xff]  ;;  %s1677_s24 = scalar_lea.vmem [#allocation7], %s1347_s9 }
  0x42   : > { %s725_s6 = sld [smem:[#allocation3]]  ;;  %v213_v3 = vld [vmem:[%s1636_s13 + $0x10] sm:$0xff]  ;;  %v214_v8 = vld [vmem:[%s1636_s13 + $0x18] sm:$0xff]  ;;  %v215_v9 = vld [vmem:[%s1636_s13 + $0x20] sm:$0xff]  ;;  %s1240_s11 = scalar_lea.sflag [#allocation6], %s1630_s8 }
  0x43   : > { %v216_v10 = vld [vmem:[%s1636_s13 + $0x28] sm:$0xff]  ;;  %v217_v14 = vld [vmem:[%s1636_s13 + $0x30] sm:$0xff]  ;;  %v218_v15 = vld [vmem:[%s1636_s13 + $0x38] sm:$0xff]  ;;  %s1350_s12 = sshll.u32 (%p1577_p9), %s1554_s1, 5 }
  0x44   : > { %v219_v16 = vld [vmem:[%s1636_s13 + $0x40] sm:$0xff]  ;;  %v220_v21 = vld [vmem:[%s1636_s13 + $0x48] sm:$0xff]  ;;  %v221_v22 = vld [vmem:[%s1636_s13 + $0x50] sm:$0xff]  ;;  %s1248_s14 = ssub.s32 (%p1577_p9), 306, %s1350_s12 }
  0x45   : > { %v222_v23 = vld [vmem:[%s1636_s13 + $0x58] sm:$0xff]  ;;  %v223_v28 = vld [vmem:[%s1636_s13 + $0x60] sm:$0xff]  ;;  %v224_v29 = vld [vmem:[%s1636_s13 + $0x68] sm:$0xff]  ;;  %p1249_p6 = scmp.lt.s32.totalorder (%p1577_p9), %s1248_s14, 32 }
  0x46   : > { %v225_v30 = vld [vmem:[%s1636_s13 + $0x70] sm:$0xff]  ;;  %v226_v35 = vld [vmem:[%s1636_s13 + $0x78] sm:$0xff]  ;;  %v227_v40 = vld [vmem:[%s1636_s13 + $0x80] sm:$0xff] }
  0x47   : > { %v1643_v1 = vstv %s467_s4  ;;  %v228_v41 = vld [vmem:[%s1636_s13 + $0x88] sm:$0xff]  ;;  %v229_v42 = vld [vmem:[%s1636_s13 + $0x90] sm:$0xff]  ;;  %v230_v47 = vld [vmem:[%s1636_s13 + $0x98] sm:$0xff] }
  0x48   : > { %v469_v4 = vmul.f32 %v1643_v1, %v211_v0  ;;  %v1648_v5 = vstv %s725_s6  ;;  %v470_v6 = vmul.f32 %v1643_v1, %v212_v2  ;;  %v471_v7 = vmul.f32 %v1643_v1, %v213_v3  ;;  %v231_v48 = vld [vmem:[%s1636_s13 + $0xa0] sm:$0xff]  ;;  %v232_v49 = vld [vmem:[%s1636_s13 + $0xa8] sm:$0xff]  ;;  %v233_v54 = vld [vmem:[%s1636_s13 + $0xb0] sm:$0xff] }
  0x49   : > { %v472_v11 = vmul.f32 %v1643_v1, %v214_v8  ;;  %v473_v12 = vmul.f32 %v1643_v1, %v215_v9  ;;  %v474_v13 = vmul.f32 %v1643_v1, %v216_v10  ;;  %v475_v20 = vmul.f32 %v1643_v1, %v217_v14  ;;  %v234_v59 = vld [vmem:[%s1636_s13 + $0xb8] sm:$0xff]  ;;  %v235_v0 = vld [vmem:[%s1636_s13 + $0xc0] sm:$0xff]  ;;  %v236_v2 = vld [vmem:[%s1636_s13 + $0xc8] sm:$0xff] }
  0x4a   : > { %v727_v17 = vadd.f32 %v1648_v5, %v469_v4  ;;  %v728_v18 = vadd.f32 %v1648_v5, %v470_v6  ;;  %v729_v19 = vadd.f32 %v1648_v5, %v471_v7  ;;  %v476_v27 = vmul.f32 %v1643_v1, %v218_v15  ;;  %v237_v3 = vld [vmem:[%s1636_s13 + $0xd0] sm:$0xff]  ;;  %v238_v9 = vld [vmem:[%s1636_s13 + $0xd8] sm:$0xff]  ;;  %v239_v10 = vld [vmem:[%s1636_s13 + $0xe0] sm:$0xff] }
  0x4b   : > { %v730_v24 = vadd.f32 %v1648_v5, %v472_v11  ;;  %v731_v25 = vadd.f32 %v1648_v5, %v473_v12  ;;  %v732_v26 = vadd.f32 %v1648_v5, %v474_v13  ;;  %v733_v31 = vadd.f32 %v1648_v5, %v475_v20  ;;  %v240_v11 = vld [vmem:[%s1636_s13 + $0xe8] sm:$0xff] }
  0x4c   : > { %983 = vst [vmem:[%s1677_s24] sm:$0xff] %v727_v17  ;;  %984 = vst [vmem:[%s1677_s24 + $0x8] sm:$0xff] %v728_v18  ;;  %v477_v32 = vmul.f32 %v1643_v1, %v219_v16  ;;  %v478_v33 = vmul.f32 %v1643_v1, %v220_v21  ;;  %v479_v34 = vmul.f32 %v1643_v1, %v221_v22  ;;  %v241_v16 = vld [vmem:[%s1636_s13 + $0xf0] sm:$0xff]  ;;  %v242_v21 = vld [vmem:[%s1636_s13 + $0xf8] sm:$0xff] }
  0x4d   : > { %985 = vst [vmem:[%s1677_s24 + $0x10] sm:$0xff] %v729_v19  ;;  %986 = vst [vmem:[%s1677_s24 + $0x18] sm:$0xff] %v730_v24  ;;  %v734_v36 = vadd.f32 %v1648_v5, %v476_v27  ;;  %v480_v37 = vmul.f32 %v1643_v1, %v222_v23  ;;  %v481_v38 = vmul.f32 %v1643_v1, %v223_v28  ;;  %v244_v27 = vld [vmem:[%s1636_s13 + $0x108] sm:$0xff]  ;;  %v245_v28 = vld [vmem:[%s1636_s13 + $0x110] sm:$0xff] }
  0x4e   : > { %987 = vst [vmem:[%s1677_s24 + $0x20] sm:$0xff] %v731_v25  ;;  %988 = vst [vmem:[%s1677_s24 + $0x28] sm:$0xff] %v732_v26  ;;  %v482_v39 = vmul.f32 %v1643_v1, %v224_v29  ;;  %v735_v43 = vadd.f32 %v1648_v5, %v477_v32  ;;  %v736_v44 = vadd.f32 %v1648_v5, %v478_v33  ;;  %v243_v26 = vld [vmem:[%s1636_s13 + $0x100] sm:$0xff]  ;;  %v246_v33 = vld [vmem:[%s1636_s13 + $0x118] sm:$0xff] }
  0x4f   : > { %989 = vst [vmem:[%s1677_s24 + $0x30] sm:$0xff] %v733_v31  ;;  %v737_v45 = vadd.f32 %v1648_v5, %v479_v34  ;;  %v483_v46 = vmul.f32 %v1643_v1, %v225_v30  ;;  %990 = vst [vmem:[%s1677_s24 + $0x38] sm:$0xff] %v734_v36  ;;  %v738_v50 = vadd.f32 %v1648_v5, %v480_v37  ;;  %v247_v34 = vld [vmem:[%s1636_s13 + $0x120] sm:$0xff] }
  0x50   : > { %v739_v51 = vadd.f32 %v1648_v5, %v481_v38  ;;  %v740_v52 = vadd.f32 %v1648_v5, %v482_v39  ;;  %v484_v53 = vmul.f32 %v1643_v1, %v226_v35  ;;  %991 = vst [vmem:[%s1677_s24 + $0x40] sm:$0xff] %v735_v43  ;;  %992 = vst [vmem:[%s1677_s24 + $0x48] sm:$0xff] %v736_v44  ;;  %v248_v35 = vld [vmem:[%s1636_s13 + $0x128] sm:$0xff] }
  0x51   : > { %993 = vst [vmem:[%s1677_s24 + $0x50] sm:$0xff] %v737_v45  ;;  %v741_v55 = vadd.f32 %v1648_v5, %v483_v46  ;;  %v485_v56 = vmul.f32 %v1643_v1, %v227_v40  ;;  %v486_v57 = vmul.f32 %v1643_v1, %v228_v41  ;;  %v487_v58 = vmul.f32 %v1643_v1, %v229_v42  ;;  %v249_v40 = vld [vmem:[%s1636_s13 + $0x130] sm:$0xff]  ;;  %v250_v45 = vld [vmem:[%s1636_s13 + $0x138] sm:$0xff] }
  0x52   : > { %994 = vst [vmem:[%s1677_s24 + $0x58] sm:$0xff] %v738_v50  ;;  %995 = vst [vmem:[%s1677_s24 + $0x60] sm:$0xff] %v739_v51  ;;  %v742_v60 = vadd.f32 %v1648_v5, %v484_v53  ;;  %v488_v61 = vmul.f32 %v1643_v1, %v230_v47  ;;  %v489_v62 = vmul.f32 %v1643_v1, %v231_v48  ;;  %v251_v50 = vld [vmem:[%s1636_s13 + $0x140] sm:$0xff]  ;;  %v252_v51 = vld [vmem:[%s1636_s13 + $0x148] sm:$0xff] }
  0x53   : > { %996 = vst [vmem:[%s1677_s24 + $0x68] sm:$0xff] %v740_v52  ;;  %v490_v63 = vmul.f32 %v1643_v1, %v232_v49  ;;  %997 = vst [vmem:[%s1677_s24 + $0x70] sm:$0xff] %v741_v55  ;;  %v743_v4 = vadd.f32 %v1648_v5, %v485_v56  ;;  %v744_v6 = vadd.f32 %v1648_v5, %v486_v57  ;;  %v253_v52 = vld [vmem:[%s1636_s13 + $0x150] sm:$0xff]  ;;  %v254_v57 = vld [vmem:[%s1636_s13 + $0x158] sm:$0xff] }
  0x54   : > { %v745_v7 = vadd.f32 %v1648_v5, %v487_v58  ;;  %v491_v8 = vmul.f32 %v1643_v1, %v233_v54  ;;  %998 = vst [vmem:[%s1677_s24 + $0x78] sm:$0xff] %v742_v60  ;;  %v746_v12 = vadd.f32 %v1648_v5, %v488_v61  ;;  %v747_v13 = vadd.f32 %v1648_v5, %v489_v62  ;;  %v255_v58 = vld [vmem:[%s1636_s13 + $0x160] sm:$0xff] }
  0x55   : > { %v748_v14 = vadd.f32 %v1648_v5, %v490_v63  ;;  %v492_v15 = vmul.f32 %v1643_v1, %v234_v59  ;;  %999 = vst [vmem:[%s1677_s24 + $0x80] sm:$0xff] %v743_v4  ;;  %1000 = vst [vmem:[%s1677_s24 + $0x88] sm:$0xff] %v744_v6  ;;  %v493_v18 = vmul.f32 %v1643_v1, %v235_v0  ;;  %v256_v59 = vld [vmem:[%s1636_s13 + $0x168] sm:$0xff]  ;;  %v257_v0 = vld [vmem:[%s1636_s13 + $0x170] sm:$0xff] }
  0x56   : > { %1001 = vst [vmem:[%s1677_s24 + $0x90] sm:$0xff] %v745_v7  ;;  %v749_v17 = vadd.f32 %v1648_v5, %v491_v8  ;;  %v494_v19 = vmul.f32 %v1643_v1, %v236_v2  ;;  %v495_v20 = vmul.f32 %v1643_v1, %v237_v3  ;;  %1002 = vst [vmem:[%s1677_s24 + $0x98] sm:$0xff] %v746_v12  ;;  %v258_v7 = vld [vmem:[%s1636_s13 + $0x178] sm:$0xff]  ;;  %v259_v12 = vld [vmem:[%s1636_s13 + $0x180] sm:$0xff] }
  0x57   : > { %1003 = vst [vmem:[%s1677_s24 + $0xa0] sm:$0xff] %v747_v13  ;;  %1004 = vst [vmem:[%s1677_s24 + $0xa8] sm:$0xff] %v748_v14  ;;  %v750_v22 = vadd.f32 %v1648_v5, %v492_v15  ;;  %v496_v23 = vmul.f32 %v1643_v1, %v238_v9  ;;  %v497_v24 = vmul.f32 %v1643_v1, %v239_v10  ;;  %v260_v13 = vld [vmem:[%s1636_s13 + $0x188] sm:$0xff]  ;;  %v261_v14 = vld [vmem:[%s1636_s13 + $0x190] sm:$0xff] }
  0x58   : > { %v498_v25 = vmul.f32 %v1643_v1, %v240_v11  ;;  %1005 = vst [vmem:[%s1677_s24 + $0xb0] sm:$0xff] %v749_v17  ;;  %v751_v29 = vadd.f32 %v1648_v5, %v493_v18  ;;  %v752_v30 = vadd.f32 %v1648_v5, %v494_v19  ;;  %v753_v31 = vadd.f32 %v1648_v5, %v495_v20  ;;  %v262_v19 = vld [vmem:[%s1636_s13 + $0x198] sm:$0xff]  ;;  %v263_v20 = vld [vmem:[%s1636_s13 + $0x1a0] sm:$0xff] }
  0x59   : > { %v499_v32 = vmul.f32 %v1643_v1, %v241_v16  ;;  %1006 = vst [vmem:[%s1677_s24 + $0xb8] sm:$0xff] %v750_v22  ;;  %v754_v36 = vadd.f32 %v1648_v5, %v496_v23  ;;  %v755_v37 = vadd.f32 %v1648_v5, %v497_v24  ;;  %v500_v39 = vmul.f32 %v1643_v1, %v242_v21  ;;  %v264_v21 = vld [vmem:[%s1636_s13 + $0x1a8] sm:$0xff] }
  0x5a   : > { %v756_v38 = vadd.f32 %v1648_v5, %v498_v25  ;;  %1007 = vst [vmem:[%s1677_s24 + $0xc0] sm:$0xff] %v751_v29  ;;  %1008 = vst [vmem:[%s1677_s24 + $0xc8] sm:$0xff] %v752_v30  ;;  %v501_v42 = vmul.f32 %v1643_v1, %v243_v26  ;;  %v502_v43 = vmul.f32 %v1643_v1, %v244_v27  ;;  %v265_v26 = vld [vmem:[%s1636_s13 + $0x1b0] sm:$0xff] }
  0x5b   : > { %1009 = vst [vmem:[%s1677_s24 + $0xd0] sm:$0xff] %v753_v31  ;;  %v757_v41 = vadd.f32 %v1648_v5, %v499_v32  ;;  %v503_v44 = vmul.f32 %v1643_v1, %v245_v28  ;;  %1010 = vst [vmem:[%s1677_s24 + $0xd8] sm:$0xff] %v754_v36  ;;  %v758_v46 = vadd.f32 %v1648_v5, %v500_v39  ;;  %v266_v31 = vld [vmem:[%s1636_s13 + $0x1b8] sm:$0xff]  ;;  %v267_v36 = vld [vmem:[%s1636_s13 + $0x1c0] sm:$0xff] }
  0x5c   : > { %1011 = vst [vmem:[%s1677_s24 + $0xe0] sm:$0xff] %v755_v37  ;;  %1012 = vst [vmem:[%s1677_s24 + $0xe8] sm:$0xff] %v756_v38  ;;  %v504_v47 = vmul.f32 %v1643_v1, %v246_v33  ;;  %v505_v48 = vmul.f32 %v1643_v1, %v247_v34  ;;  %v506_v49 = vmul.f32 %v1643_v1, %v248_v35  ;;  %v268_v37 = vld [vmem:[%s1636_s13 + $0x1c8] sm:$0xff]  ;;  %v269_v38 = vld [vmem:[%s1636_s13 + $0x1d0] sm:$0xff] }
  0x5d   : > { %1013 = vst [vmem:[%s1677_s24 + $0xf0] sm:$0xff] %v757_v41  ;;  %v759_v53 = vadd.f32 %v1648_v5, %v501_v42  ;;  %v760_v54 = vadd.f32 %v1648_v5, %v502_v43  ;;  %v761_v55 = vadd.f32 %v1648_v5, %v503_v44  ;;  %v507_v56 = vmul.f32 %v1643_v1, %v249_v40  ;;  %v270_v43 = vld [vmem:[%s1636_s13 + $0x1d8] sm:$0xff]  ;;  %v271_v44 = vld [vmem:[%s1636_s13 + $0x1e0] sm:$0xff] }
  0x5e   : > { %1014 = vst [vmem:[%s1677_s24 + $0xf8] sm:$0xff] %v758_v46  ;;  %v762_v60 = vadd.f32 %v1648_v5, %v504_v47  ;;  %v763_v61 = vadd.f32 %v1648_v5, %v505_v48  ;;  %v764_v62 = vadd.f32 %v1648_v5, %v506_v49  ;;  %v508_v63 = vmul.f32 %v1643_v1, %v250_v45  ;;  %v272_v45 = vld [vmem:[%s1636_s13 + $0x1e8] sm:$0xff] }
  0x5f   : > { %1015 = vst [vmem:[%s1677_s24 + $0x100] sm:$0xff] %v759_v53  ;;  %1016 = vst [vmem:[%s1677_s24 + $0x108] sm:$0xff] %v760_v54  ;;  %v765_v2 = vadd.f32 %v1648_v5, %v507_v56  ;;  %v509_v3 = vmul.f32 %v1643_v1, %v251_v50  ;;  %v510_v4 = vmul.f32 %v1643_v1, %v252_v51  ;;  %v273_v50 = vld [vmem:[%s1636_s13 + $0x1f0] sm:$0xff] }
  0x60   : > { %1017 = vst [vmem:[%s1677_s24 + $0x110] sm:$0xff] %v761_v55  ;;  %v511_v6 = vmul.f32 %v1643_v1, %v253_v52  ;;  %1018 = vst [vmem:[%s1677_s24 + $0x118] sm:$0xff] %v762_v60  ;;  %v766_v8 = vadd.f32 %v1648_v5, %v508_v63  ;;  %v512_v9 = vmul.f32 %v1643_v1, %v254_v57  ;;  %v274_v55 = vld [vmem:[%s1636_s13 + $0x1f8] sm:$0xff]  ;;  %v275_v60 = vld [vmem:[%s1636_s13 + $0x200] sm:$0xff] }
  0x61   : > { %1019 = vst [vmem:[%s1677_s24 + $0x120] sm:$0xff] %v763_v61  ;;  %1020 = vst [vmem:[%s1677_s24 + $0x128] sm:$0xff] %v764_v62  ;;  %v513_v10 = vmul.f32 %v1643_v1, %v255_v58  ;;  %v514_v11 = vmul.f32 %v1643_v1, %v256_v59  ;;  %v767_v15 = vadd.f32 %v1648_v5, %v509_v3  ;;  %v276_v61 = vld [vmem:[%s1636_s13 + $0x208] sm:$0xff]  ;;  %v277_v62 = vld [vmem:[%s1636_s13 + $0x210] sm:$0xff] }
  0x62   : > { %1021 = vst [vmem:[%s1677_s24 + $0x130] sm:$0xff] %v765_v2  ;;  %v768_v16 = vadd.f32 %v1648_v5, %v510_v4  ;;  %v769_v17 = vadd.f32 %v1648_v5, %v511_v6  ;;  %v515_v18 = vmul.f32 %v1643_v1, %v257_v0  ;;  %1022 = vst [vmem:[%s1677_s24 + $0x138] sm:$0xff] %v766_v8  ;;  %v278_v4 = vld [vmem:[%s1636_s13 + $0x218] sm:$0xff]  ;;  %v279_v6 = vld [vmem:[%s1636_s13 + $0x220] sm:$0xff] }
  0x63   : > { %v770_v22 = vadd.f32 %v1648_v5, %v512_v9  ;;  %v771_v23 = vadd.f32 %v1648_v5, %v513_v10  ;;  %v772_v24 = vadd.f32 %v1648_v5, %v514_v11  ;;  %v516_v25 = vmul.f32 %v1643_v1, %v258_v7  ;;  %1023 = vst [vmem:[%s1677_s24 + $0x140] sm:$0xff] %v767_v15  ;;  %v280_v7 = vld [vmem:[%s1636_s13 + $0x228] sm:$0xff] }
  0x64   : > { %1024 = vst [vmem:[%s1677_s24 + $0x148] sm:$0xff] %v768_v16  ;;  %1025 = vst [vmem:[%s1677_s24 + $0x150] sm:$0xff] %v769_v17  ;;  %v773_v27 = vadd.f32 %v1648_v5, %v515_v18  ;;  %v517_v28 = vmul.f32 %v1643_v1, %v259_v12  ;;  %v518_v29 = vmul.f32 %v1643_v1, %v260_v13  ;;  %v281_v12 = vld [vmem:[%s1636_s13 + $0x230] sm:$0xff]  ;;  %v282_v17 = vld [vmem:[%s1636_s13 + $0x238] sm:$0xff] }
  0x65   : > { %v519_v30 = vmul.f32 %v1643_v1, %v261_v14  ;;  %1026 = vst [vmem:[%s1677_s24 + $0x158] sm:$0xff] %v770_v22  ;;  %1027 = vst [vmem:[%s1677_s24 + $0x160] sm:$0xff] %v771_v23  ;;  %v774_v32 = vadd.f32 %v1648_v5, %v516_v25  ;;  %v520_v33 = vmul.f32 %v1643_v1, %v262_v19  ;;  %v283_v22 = vld [vmem:[%s1636_s13 + $0x240] sm:$0xff]  ;;  %v284_v23 = vld [vmem:[%s1636_s13 + $0x248] sm:$0xff] }
  0x66   : > { %1028 = vst [vmem:[%s1677_s24 + $0x168] sm:$0xff] %v772_v24  ;;  %v521_v34 = vmul.f32 %v1643_v1, %v263_v20  ;;  %v522_v35 = vmul.f32 %v1643_v1, %v264_v21  ;;  %1029 = vst [vmem:[%s1677_s24 + $0x170] sm:$0xff] %v773_v27  ;;  %v775_v39 = vadd.f32 %v1648_v5, %v517_v28  ;;  %v285_v24 = vld [vmem:[%s1636_s13 + $0x250] sm:$0xff] }
  0x67   : > { %v776_v40 = vadd.f32 %v1648_v5, %v518_v29  ;;  %v777_v41 = vadd.f32 %v1648_v5, %v519_v30  ;;  %v523_v42 = vmul.f32 %v1643_v1, %v265_v26  ;;  %1030 = vst [vmem:[%s1677_s24 + $0x178] sm:$0xff] %v774_v32  ;;  %v778_v46 = vadd.f32 %v1648_v5, %v520_v33  ;;  %v286_v29 = vld [vmem:[%s1636_s13 + $0x258] sm:$0xff]  ;;  %v287_v30 = vld [vmem:[%s1636_s13 + $0x260] sm:$0xff] }
  0x68   : > { %v779_v47 = vadd.f32 %v1648_v5, %v521_v34  ;;  %v780_v48 = vadd.f32 %v1648_v5, %v522_v35  ;;  %v524_v49 = vmul.f32 %v1643_v1, %v266_v31  ;;  %1031 = vst [vmem:[%s1677_s24 + $0x180] sm:$0xff] %v775_v39  ;;  %v525_v52 = vmul.f32 %v1643_v1, %v267_v36  ;;  %v288_v31 = vld [vmem:[%s1636_s13 + $0x268] sm:$0xff]  ;;  %v289_v36 = vld [vmem:[%s1636_s13 + $0x270] sm:$0xff] }
  0x69   : > { %1032 = vst [vmem:[%s1677_s24 + $0x188] sm:$0xff] %v776_v40  ;;  %1033 = vst [vmem:[%s1677_s24 + $0x190] sm:$0xff] %v777_v41  ;;  %v781_v51 = vadd.f32 %v1648_v5, %v523_v42  ;;  %v526_v53 = vmul.f32 %v1643_v1, %v268_v37  ;;  %v527_v54 = vmul.f32 %v1643_v1, %v269_v38  ;;  %v290_v41 = vld [vmem:[%s1636_s13 + $0x278] sm:$0xff] }
  0x6a   : > { %1034 = vst [vmem:[%s1677_s24 + $0x198] sm:$0xff] %v778_v46  ;;  %1035 = vst [vmem:[%s1677_s24 + $0x1a0] sm:$0xff] %v779_v47  ;;  %v782_v56 = vadd.f32 %v1648_v5, %v524_v49  ;;  %v528_v57 = vmul.f32 %v1643_v1, %v270_v43  ;;  %v529_v58 = vmul.f32 %v1643_v1, %v271_v44  ;;  %v291_v46 = vld [vmem:[%s1636_s13 + $0x280] sm:$0xff]  ;;  %v292_v47 = vld [vmem:[%s1636_s13 + $0x288] sm:$0xff] }
  0x6b   : > { %1036 = vst [vmem:[%s1677_s24 + $0x1a8] sm:$0xff] %v780_v48  ;;  %v530_v59 = vmul.f32 %v1643_v1, %v272_v45  ;;  %1037 = vst [vmem:[%s1677_s24 + $0x1b0] sm:$0xff] %v781_v51  ;;  %v783_v63 = vadd.f32 %v1648_v5, %v525_v52  ;;  %v784_v0 = vadd.f32 %v1648_v5, %v526_v53  ;;  %v293_v48 = vld [vmem:[%s1636_s13 + $0x290] sm:$0xff]  ;;  %v294_v53 = vld [vmem:[%s1636_s13 + $0x298] sm:$0xff] }
  0x6c   : > { %v785_v2 = vadd.f32 %v1648_v5, %v527_v54  ;;  %v531_v3 = vmul.f32 %v1643_v1, %v273_v50  ;;  %1038 = vst [vmem:[%s1677_s24 + $0x1b8] sm:$0xff] %v782_v56  ;;  %v786_v8 = vadd.f32 %v1648_v5, %v528_v57  ;;  %v787_v9 = vadd.f32 %v1648_v5, %v529_v58  ;;  %v295_v54 = vld [vmem:[%s1636_s13 + $0x2a0] sm:$0xff] }
  0x6d   : > { %v788_v10 = vadd.f32 %v1648_v5, %v530_v59  ;;  %v532_v11 = vmul.f32 %v1643_v1, %v274_v55  ;;  %1039 = vst [vmem:[%s1677_s24 + $0x1c0] sm:$0xff] %v783_v63  ;;  %1040 = vst [vmem:[%s1677_s24 + $0x1c8] sm:$0xff] %v784_v0  ;;  %v533_v14 = vmul.f32 %v1643_v1, %v275_v60  ;;  %v296_v55 = vld [vmem:[%s1636_s13 + $0x2a8] sm:$0xff]  ;;  %v297_v60 = vld [vmem:[%s1636_s13 + $0x2b0] sm:$0xff] }
  0x6e   : > { %1041 = vst [vmem:[%s1677_s24 + $0x1d0] sm:$0xff] %v785_v2  ;;  %v789_v13 = vadd.f32 %v1648_v5, %v531_v3  ;;  %v534_v15 = vmul.f32 %v1643_v1, %v276_v61  ;;  %v535_v16 = vmul.f32 %v1643_v1, %v277_v62  ;;  %1042 = vst [vmem:[%s1677_s24 + $0x1d8] sm:$0xff] %v786_v8  ;;  %v298_v2 = vld [vmem:[%s1636_s13 + $0x2b8] sm:$0xff]  ;;  %v299_v8 = vld [vmem:[%s1636_s13 + $0x2c0] sm:$0xff] }
  0x6f   : > { %1043 = vst [vmem:[%s1677_s24 + $0x1e0] sm:$0xff] %v787_v9  ;;  %1044 = vst [vmem:[%s1677_s24 + $0x1e8] sm:$0xff] %v788_v10  ;;  %v790_v18 = vadd.f32 %v1648_v5, %v532_v11  ;;  %v536_v19 = vmul.f32 %v1643_v1, %v278_v4  ;;  %v537_v20 = vmul.f32 %v1643_v1, %v279_v6  ;;  %v300_v9 = vld [vmem:[%s1636_s13 + $0x2c8] sm:$0xff]  ;;  %v301_v10 = vld [vmem:[%s1636_s13 + $0x2d0] sm:$0xff] }
  0x70   : > { %v538_v21 = vmul.f32 %v1643_v1, %v280_v7  ;;  %1045 = vst [vmem:[%s1677_s24 + $0x1f0] sm:$0xff] %v789_v13  ;;  %v791_v25 = vadd.f32 %v1648_v5, %v533_v14  ;;  %v792_v26 = vadd.f32 %v1648_v5, %v534_v15  ;;  %v793_v27 = vadd.f32 %v1648_v5, %v535_v16  ;;  %v302_v15 = vld [vmem:[%s1636_s13 + $0x2d8] sm:$0xff]  ;;  %v303_v16 = vld [vmem:[%s1636_s13 + $0x2e0] sm:$0xff] }
  0x71   : > { %v539_v28 = vmul.f32 %v1643_v1, %v281_v12  ;;  %1046 = vst [vmem:[%s1677_s24 + $0x1f8] sm:$0xff] %v790_v18  ;;  %v794_v32 = vadd.f32 %v1648_v5, %v536_v19  ;;  %v795_v33 = vadd.f32 %v1648_v5, %v537_v20  ;;  %v540_v35 = vmul.f32 %v1643_v1, %v282_v17  ;;  %v304_v17 = vld [vmem:[%s1636_s13 + $0x2e8] sm:$0xff] }
  0x72   : > { %v796_v34 = vadd.f32 %v1648_v5, %v538_v21  ;;  %1047 = vst [vmem:[%s1677_s24 + $0x200] sm:$0xff] %v791_v25  ;;  %1048 = vst [vmem:[%s1677_s24 + $0x208] sm:$0xff] %v792_v26  ;;  %v541_v38 = vmul.f32 %v1643_v1, %v283_v22  ;;  %v542_v39 = vmul.f32 %v1643_v1, %v284_v23  ;;  %v305_v22 = vld [vmem:[%s1636_s13 + $0x2f0] sm:$0xff] }
  0x73   : > { %1049 = vst [vmem:[%s1677_s24 + $0x210] sm:$0xff] %v793_v27  ;;  %v797_v37 = vadd.f32 %v1648_v5, %v539_v28  ;;  %v543_v40 = vmul.f32 %v1643_v1, %v285_v24  ;;  %1050 = vst [vmem:[%s1677_s24 + $0x218] sm:$0xff] %v794_v32  ;;  %v798_v42 = vadd.f32 %v1648_v5, %v540_v35  ;;  %v306_v27 = vld [vmem:[%s1636_s13 + $0x2f8] sm:$0xff]  ;;  %v307_v32 = vld [vmem:[%s1636_s13 + $0x300] sm:$0xff] }
  0x74   : > { %1051 = vst [vmem:[%s1677_s24 + $0x220] sm:$0xff] %v795_v33  ;;  %1052 = vst [vmem:[%s1677_s24 + $0x228] sm:$0xff] %v796_v34  ;;  %v544_v43 = vmul.f32 %v1643_v1, %v286_v29  ;;  %v545_v44 = vmul.f32 %v1643_v1, %v287_v30  ;;  %v546_v45 = vmul.f32 %v1643_v1, %v288_v31  ;;  %v308_v33 = vld [vmem:[%s1636_s13 + $0x308] sm:$0xff]  ;;  %v309_v34 = vld [vmem:[%s1636_s13 + $0x310] sm:$0xff] }
  0x75   : > { %1053 = vst [vmem:[%s1677_s24 + $0x230] sm:$0xff] %v797_v37  ;;  %v799_v49 = vadd.f32 %v1648_v5, %v541_v38  ;;  %v800_v50 = vadd.f32 %v1648_v5, %v542_v39  ;;  %v801_v51 = vadd.f32 %v1648_v5, %v543_v40  ;;  %v547_v52 = vmul.f32 %v1643_v1, %v289_v36  ;;  %v310_v39 = vld [vmem:[%s1636_s13 + $0x318] sm:$0xff]  ;;  %v311_v40 = vld [vmem:[%s1636_s13 + $0x320] sm:$0xff] }
  0x76   : > { %1054 = vst [vmem:[%s1677_s24 + $0x238] sm:$0xff] %v798_v42  ;;  %v802_v56 = vadd.f32 %v1648_v5, %v544_v43  ;;  %v803_v57 = vadd.f32 %v1648_v5, %v545_v44  ;;  %v804_v58 = vadd.f32 %v1648_v5, %v546_v45  ;;  %v548_v59 = vmul.f32 %v1643_v1, %v290_v41  ;;  %v312_v41 = vld [vmem:[%s1636_s13 + $0x328] sm:$0xff] }
  0x77   : > { %1055 = vst [vmem:[%s1677_s24 + $0x240] sm:$0xff] %v799_v49  ;;  %1056 = vst [vmem:[%s1677_s24 + $0x248] sm:$0xff] %v800_v50  ;;  %v805_v61 = vadd.f32 %v1648_v5, %v547_v52  ;;  %v549_v62 = vmul.f32 %v1643_v1, %v291_v46  ;;  %v550_v63 = vmul.f32 %v1643_v1, %v292_v47  ;;  %v313_v46 = vld [vmem:[%s1636_s13 + $0x330] sm:$0xff] }
  0x78   : > { %1057 = vst [vmem:[%s1677_s24 + $0x250] sm:$0xff] %v801_v51  ;;  %v551_v0 = vmul.f32 %v1643_v1, %v293_v48  ;;  %1058 = vst [vmem:[%s1677_s24 + $0x258] sm:$0xff] %v802_v56  ;;  %v806_v3 = vadd.f32 %v1648_v5, %v548_v59  ;;  %v552_v4 = vmul.f32 %v1643_v1, %v294_v53  ;;  %v314_v51 = vld [vmem:[%s1636_s13 + $0x338] sm:$0xff]  ;;  %v315_v56 = vld [vmem:[%s1636_s13 + $0x340] sm:$0xff] }
  0x79   : > { %1059 = vst [vmem:[%s1677_s24 + $0x260] sm:$0xff] %v803_v57  ;;  %1060 = vst [vmem:[%s1677_s24 + $0x268] sm:$0xff] %v804_v58  ;;  %v553_v6 = vmul.f32 %v1643_v1, %v295_v54  ;;  %v554_v7 = vmul.f32 %v1643_v1, %v296_v55  ;;  %v807_v11 = vadd.f32 %v1648_v5, %v549_v62  ;;  %v316_v57 = vld [vmem:[%s1636_s13 + $0x348] sm:$0xff]  ;;  %v317_v58 = vld [vmem:[%s1636_s13 + $0x350] sm:$0xff] }
  0x7a   : > { %1061 = vst [vmem:[%s1677_s24 + $0x270] sm:$0xff] %v805_v61  ;;  %v808_v12 = vadd.f32 %v1648_v5, %v550_v63  ;;  %v809_v13 = vadd.f32 %v1648_v5, %v551_v0  ;;  %v555_v14 = vmul.f32 %v1643_v1, %v297_v60  ;;  %1062 = vst [vmem:[%s1677_s24 + $0x278] sm:$0xff] %v806_v3  ;;  %v318_v63 = vld [vmem:[%s1636_s13 + $0x358] sm:$0xff]  ;;  %v319_v0 = vld [vmem:[%s1636_s13 + $0x360] sm:$0xff] }
  0x7b   : > { %v810_v18 = vadd.f32 %v1648_v5, %v552_v4  ;;  %v811_v19 = vadd.f32 %v1648_v5, %v553_v6  ;;  %v812_v20 = vadd.f32 %v1648_v5, %v554_v7  ;;  %v556_v21 = vmul.f32 %v1643_v1, %v298_v2  ;;  %1063 = vst [vmem:[%s1677_s24 + $0x280] sm:$0xff] %v807_v11  ;;  %v320_v2 = vld [vmem:[%s1636_s13 + $0x368] sm:$0xff] }
  0x7c   : > { %1064 = vst [vmem:[%s1677_s24 + $0x288] sm:$0xff] %v808_v12  ;;  %1065 = vst [vmem:[%s1677_s24 + $0x290] sm:$0xff] %v809_v13  ;;  %v813_v23 = vadd.f32 %v1648_v5, %v555_v14  ;;  %v557_v24 = vmul.f32 %v1643_v1, %v299_v8  ;;  %v558_v25 = vmul.f32 %v1643_v1, %v300_v9  ;;  %v321_v8 = vld [vmem:[%s1636_s13 + $0x370] sm:$0xff]  ;;  %v322_v13 = vld [vmem:[%s1636_s13 + $0x378] sm:$0xff] }
  0x7d   : > { %v559_v26 = vmul.f32 %v1643_v1, %v301_v10  ;;  %1066 = vst [vmem:[%s1677_s24 + $0x298] sm:$0xff] %v810_v18  ;;  %1067 = vst [vmem:[%s1677_s24 + $0x2a0] sm:$0xff] %v811_v19  ;;  %v814_v28 = vadd.f32 %v1648_v5, %v556_v21  ;;  %v560_v29 = vmul.f32 %v1643_v1, %v302_v15  ;;  %v323_v18 = vld [vmem:[%s1636_s13 + $0x380] sm:$0xff]  ;;  %v324_v19 = vld [vmem:[%s1636_s13 + $0x388] sm:$0xff] }
  0x7e   : > { %1068 = vst [vmem:[%s1677_s24 + $0x2a8] sm:$0xff] %v812_v20  ;;  %v561_v30 = vmul.f32 %v1643_v1, %v303_v16  ;;  %v562_v31 = vmul.f32 %v1643_v1, %v304_v17  ;;  %1069 = vst [vmem:[%s1677_s24 + $0x2b0] sm:$0xff] %v813_v23  ;;  %v815_v35 = vadd.f32 %v1648_v5, %v557_v24  ;;  %v325_v20 = vld [vmem:[%s1636_s13 + $0x390] sm:$0xff] }
  0x7f   : > { %v816_v36 = vadd.f32 %v1648_v5, %v558_v25  ;;  %v817_v37 = vadd.f32 %v1648_v5, %v559_v26  ;;  %v563_v38 = vmul.f32 %v1643_v1, %v305_v22  ;;  %1070 = vst [vmem:[%s1677_s24 + $0x2b8] sm:$0xff] %v814_v28  ;;  %v818_v42 = vadd.f32 %v1648_v5, %v560_v29  ;;  %v326_v25 = vld [vmem:[%s1636_s13 + $0x398] sm:$0xff]  ;;  %v327_v26 = vld [vmem:[%s1636_s13 + $0x3a0] sm:$0xff] }
  0x80   : > { %v819_v43 = vadd.f32 %v1648_v5, %v561_v30  ;;  %v820_v44 = vadd.f32 %v1648_v5, %v562_v31  ;;  %v564_v45 = vmul.f32 %v1643_v1, %v306_v27  ;;  %1071 = vst [vmem:[%s1677_s24 + $0x2c0] sm:$0xff] %v815_v35  ;;  %v565_v48 = vmul.f32 %v1643_v1, %v307_v32  ;;  %v328_v27 = vld [vmem:[%s1636_s13 + $0x3a8] sm:$0xff]  ;;  %v329_v32 = vld [vmem:[%s1636_s13 + $0x3b0] sm:$0xff] }
  0x81   : > { %1072 = vst [vmem:[%s1677_s24 + $0x2c8] sm:$0xff] %v816_v36  ;;  %1073 = vst [vmem:[%s1677_s24 + $0x2d0] sm:$0xff] %v817_v37  ;;  %v821_v47 = vadd.f32 %v1648_v5, %v563_v38  ;;  %v566_v49 = vmul.f32 %v1643_v1, %v308_v33  ;;  %v567_v50 = vmul.f32 %v1643_v1, %v309_v34  ;;  %v330_v37 = vld [vmem:[%s1636_s13 + $0x3b8] sm:$0xff] }
  0x82   : > { %1074 = vst [vmem:[%s1677_s24 + $0x2d8] sm:$0xff] %v818_v42  ;;  %1075 = vst [vmem:[%s1677_s24 + $0x2e0] sm:$0xff] %v819_v43  ;;  %v822_v52 = vadd.f32 %v1648_v5, %v564_v45  ;;  %v568_v53 = vmul.f32 %v1643_v1, %v310_v39  ;;  %v569_v54 = vmul.f32 %v1643_v1, %v311_v40  ;;  %v331_v42 = vld [vmem:[%s1636_s13 + $0x3c0] sm:$0xff]  ;;  %v332_v43 = vld [vmem:[%s1636_s13 + $0x3c8] sm:$0xff] }
  0x83   : > { %1076 = vst [vmem:[%s1677_s24 + $0x2e8] sm:$0xff] %v820_v44  ;;  %v570_v55 = vmul.f32 %v1643_v1, %v312_v41  ;;  %1077 = vst [vmem:[%s1677_s24 + $0x2f0] sm:$0xff] %v821_v47  ;;  %v823_v59 = vadd.f32 %v1648_v5, %v565_v48  ;;  %v824_v60 = vadd.f32 %v1648_v5, %v566_v49  ;;  %v333_v44 = vld [vmem:[%s1636_s13 + $0x3d0] sm:$0xff]  ;;  %v334_v49 = vld [vmem:[%s1636_s13 + $0x3d8] sm:$0xff] }
  0x84   : > { %v825_v61 = vadd.f32 %v1648_v5, %v567_v50  ;;  %v571_v62 = vmul.f32 %v1643_v1, %v313_v46  ;;  %1078 = vst [vmem:[%s1677_s24 + $0x2f8] sm:$0xff] %v822_v52  ;;  %v826_v3 = vadd.f32 %v1648_v5, %v568_v53  ;;  %v827_v4 = vadd.f32 %v1648_v5, %v569_v54  ;;  %v335_v50 = vld [vmem:[%s1636_s13 + $0x3e0] sm:$0xff] }
  0x85   : > { %v828_v6 = vadd.f32 %v1648_v5, %v570_v55  ;;  %v572_v7 = vmul.f32 %v1643_v1, %v314_v51  ;;  %1079 = vst [vmem:[%s1677_s24 + $0x300] sm:$0xff] %v823_v59  ;;  %1080 = vst [vmem:[%s1677_s24 + $0x308] sm:$0xff] %v824_v60  ;;  %v573_v10 = vmul.f32 %v1643_v1, %v315_v56  ;;  %v336_v51 = vld [vmem:[%s1636_s13 + $0x3e8] sm:$0xff]  ;;  %v337_v56 = vld [vmem:[%s1636_s13 + $0x3f0] sm:$0xff] }
  0x86   : > { %1081 = vst [vmem:[%s1677_s24 + $0x310] sm:$0xff] %v825_v61  ;;  %v829_v9 = vadd.f32 %v1648_v5, %v571_v62  ;;  %v574_v11 = vmul.f32 %v1643_v1, %v316_v57  ;;  %v575_v12 = vmul.f32 %v1643_v1, %v317_v58  ;;  %1082 = vst [vmem:[%s1677_s24 + $0x318] sm:$0xff] %v826_v3  ;;  %v338_v61 = vld [vmem:[%s1636_s13 + $0x3f8] sm:$0xff]  ;;  %v339_v3 = vld [vmem:[%s1636_s13 + $0x400] sm:$0xff] }
  0x87   : > { %1083 = vst [vmem:[%s1677_s24 + $0x320] sm:$0xff] %v827_v4  ;;  %1084 = vst [vmem:[%s1677_s24 + $0x328] sm:$0xff] %v828_v6  ;;  %v830_v14 = vadd.f32 %v1648_v5, %v572_v7  ;;  %v576_v15 = vmul.f32 %v1643_v1, %v318_v63  ;;  %v577_v16 = vmul.f32 %v1643_v1, %v319_v0  ;;  %v340_v4 = vld [vmem:[%s1636_s13 + $0x408] sm:$0xff]  ;;  %v341_v6 = vld [vmem:[%s1636_s13 + $0x410] sm:$0xff] }
  0x88   : > { %v578_v17 = vmul.f32 %v1643_v1, %v320_v2  ;;  %1085 = vst [vmem:[%s1677_s24 + $0x330] sm:$0xff] %v829_v9  ;;  %v831_v21 = vadd.f32 %v1648_v5, %v573_v10  ;;  %v832_v22 = vadd.f32 %v1648_v5, %v574_v11  ;;  %v833_v23 = vadd.f32 %v1648_v5, %v575_v12  ;;  %v342_v11 = vld [vmem:[%s1636_s13 + $0x418] sm:$0xff]  ;;  %v343_v12 = vld [vmem:[%s1636_s13 + $0x420] sm:$0xff] }
  0x89   : > { %v579_v24 = vmul.f32 %v1643_v1, %v321_v8  ;;  %1086 = vst [vmem:[%s1677_s24 + $0x338] sm:$0xff] %v830_v14  ;;  %v834_v28 = vadd.f32 %v1648_v5, %v576_v15  ;;  %v835_v29 = vadd.f32 %v1648_v5, %v577_v16  ;;  %v580_v31 = vmul.f32 %v1643_v1, %v322_v13  ;;  %v344_v13 = vld [vmem:[%s1636_s13 + $0x428] sm:$0xff] }
  0x8a   : > { %v836_v30 = vadd.f32 %v1648_v5, %v578_v17  ;;  %1087 = vst [vmem:[%s1677_s24 + $0x340] sm:$0xff] %v831_v21  ;;  %1088 = vst [vmem:[%s1677_s24 + $0x348] sm:$0xff] %v832_v22  ;;  %v581_v34 = vmul.f32 %v1643_v1, %v323_v18  ;;  %v582_v35 = vmul.f32 %v1643_v1, %v324_v19  ;;  %v345_v18 = vld [vmem:[%s1636_s13 + $0x430] sm:$0xff] }
  0x8b   : > { %1089 = vst [vmem:[%s1677_s24 + $0x350] sm:$0xff] %v833_v23  ;;  %v837_v33 = vadd.f32 %v1648_v5, %v579_v24  ;;  %v583_v36 = vmul.f32 %v1643_v1, %v325_v20  ;;  %1090 = vst [vmem:[%s1677_s24 + $0x358] sm:$0xff] %v834_v28  ;;  %v838_v38 = vadd.f32 %v1648_v5, %v580_v31  ;;  %v346_v23 = vld [vmem:[%s1636_s13 + $0x438] sm:$0xff]  ;;  %v347_v28 = vld [vmem:[%s1636_s13 + $0x440] sm:$0xff] }
  0x8c   : > { %1091 = vst [vmem:[%s1677_s24 + $0x360] sm:$0xff] %v835_v29  ;;  %1092 = vst [vmem:[%s1677_s24 + $0x368] sm:$0xff] %v836_v30  ;;  %v584_v39 = vmul.f32 %v1643_v1, %v326_v25  ;;  %v585_v40 = vmul.f32 %v1643_v1, %v327_v26  ;;  %v586_v41 = vmul.f32 %v1643_v1, %v328_v27  ;;  %v348_v29 = vld [vmem:[%s1636_s13 + $0x448] sm:$0xff]  ;;  %v349_v30 = vld [vmem:[%s1636_s13 + $0x450] sm:$0xff] }
  0x8d   : > { %1093 = vst [vmem:[%s1677_s24 + $0x370] sm:$0xff] %v837_v33  ;;  %v839_v45 = vadd.f32 %v1648_v5, %v581_v34  ;;  %v840_v46 = vadd.f32 %v1648_v5, %v582_v35  ;;  %v841_v47 = vadd.f32 %v1648_v5, %v583_v36  ;;  %v587_v48 = vmul.f32 %v1643_v1, %v329_v32  ;;  %v350_v35 = vld [vmem:[%s1636_s13 + $0x458] sm:$0xff]  ;;  %v351_v36 = vld [vmem:[%s1636_s13 + $0x460] sm:$0xff] }
  0x8e   : > { %1094 = vst [vmem:[%s1677_s24 + $0x378] sm:$0xff] %v838_v38  ;;  %v842_v52 = vadd.f32 %v1648_v5, %v584_v39  ;;  %v843_v53 = vadd.f32 %v1648_v5, %v585_v40  ;;  %v844_v54 = vadd.f32 %v1648_v5, %v586_v41  ;;  %v588_v55 = vmul.f32 %v1643_v1, %v330_v37  ;;  %v352_v37 = vld [vmem:[%s1636_s13 + $0x468] sm:$0xff] }
  0x8f   : > { %1095 = vst [vmem:[%s1677_s24 + $0x380] sm:$0xff] %v839_v45  ;;  %1096 = vst [vmem:[%s1677_s24 + $0x388] sm:$0xff] %v840_v46  ;;  %v845_v57 = vadd.f32 %v1648_v5, %v587_v48  ;;  %v589_v58 = vmul.f32 %v1643_v1, %v331_v42  ;;  %v590_v59 = vmul.f32 %v1643_v1, %v332_v43  ;;  %v353_v42 = vld [vmem:[%s1636_s13 + $0x470] sm:$0xff] }
  0x90   : > { %1097 = vst [vmem:[%s1677_s24 + $0x390] sm:$0xff] %v841_v47  ;;  %v591_v60 = vmul.f32 %v1643_v1, %v333_v44  ;;  %1098 = vst [vmem:[%s1677_s24 + $0x398] sm:$0xff] %v842_v52  ;;  %v846_v62 = vadd.f32 %v1648_v5, %v588_v55  ;;  %v592_v63 = vmul.f32 %v1643_v1, %v334_v49  ;;  %v354_v47 = vld [vmem:[%s1636_s13 + $0x478] sm:$0xff]  ;;  %v355_v52 = vld [vmem:[%s1636_s13 + $0x480] sm:$0xff] }
  0x91   : > { %1099 = vst [vmem:[%s1677_s24 + $0x3a0] sm:$0xff] %v843_v53  ;;  %1100 = vst [vmem:[%s1677_s24 + $0x3a8] sm:$0xff] %v844_v54  ;;  %v593_v0 = vmul.f32 %v1643_v1, %v335_v50  ;;  %v594_v2 = vmul.f32 %v1643_v1, %v336_v51  ;;  %v847_v7 = vadd.f32 %v1648_v5, %v589_v58  ;;  %v356_v53 = vld [vmem:[%s1636_s13 + $0x488] sm:$0xff]  ;;  %v357_v54 = vld [vmem:[%s1636_s13 + $0x490] sm:$0xff] }
  0x92   : > { %1101 = vst [vmem:[%s1677_s24 + $0x3b0] sm:$0xff] %v845_v57  ;;  %v848_v8 = vadd.f32 %v1648_v5, %v590_v59  ;;  %v849_v9 = vadd.f32 %v1648_v5, %v591_v60  ;;  %v595_v10 = vmul.f32 %v1643_v1, %v337_v56  ;;  %1102 = vst [vmem:[%s1677_s24 + $0x3b8] sm:$0xff] %v846_v62  ;;  %v358_v59 = vld [vmem:[%s1636_s13 + $0x498] sm:$0xff]  ;;  %v359_v60 = vld [vmem:[%s1636_s13 + $0x4a0] sm:$0xff] }
  0x93   : > { %v850_v14 = vadd.f32 %v1648_v5, %v592_v63  ;;  %v851_v15 = vadd.f32 %v1648_v5, %v593_v0  ;;  %v852_v16 = vadd.f32 %v1648_v5, %v594_v2  ;;  %v596_v17 = vmul.f32 %v1643_v1, %v338_v61  ;;  %1103 = vst [vmem:[%s1677_s24 + $0x3c0] sm:$0xff] %v847_v7  ;;  %v360_v61 = vld [vmem:[%s1636_s13 + $0x4a8] sm:$0xff] }
  0x94   : > { %1104 = vst [vmem:[%s1677_s24 + $0x3c8] sm:$0xff] %v848_v8  ;;  %1105 = vst [vmem:[%s1677_s24 + $0x3d0] sm:$0xff] %v849_v9  ;;  %v853_v19 = vadd.f32 %v1648_v5, %v595_v10  ;;  %v597_v20 = vmul.f32 %v1643_v1, %v339_v3  ;;  %v598_v21 = vmul.f32 %v1643_v1, %v340_v4  ;;  %v361_v3 = vld [vmem:[%s1636_s13 + $0x4b0] sm:$0xff]  ;;  %v362_v9 = vld [vmem:[%s1636_s13 + $0x4b8] sm:$0xff] }
  0x95   : > { %v599_v22 = vmul.f32 %v1643_v1, %v341_v6  ;;  %1106 = vst [vmem:[%s1677_s24 + $0x3d8] sm:$0xff] %v850_v14  ;;  %1107 = vst [vmem:[%s1677_s24 + $0x3e0] sm:$0xff] %v851_v15  ;;  %v854_v24 = vadd.f32 %v1648_v5, %v596_v17  ;;  %v600_v25 = vmul.f32 %v1643_v1, %v342_v11  ;;  %v363_v14 = vld [vmem:[%s1636_s13 + $0x4c0] sm:$0xff]  ;;  %v364_v15 = vld [vmem:[%s1636_s13 + $0x4c8] sm:$0xff] }
  0x96   : > { %1108 = vst [vmem:[%s1677_s24 + $0x3e8] sm:$0xff] %v852_v16  ;;  %v601_v26 = vmul.f32 %v1643_v1, %v343_v12  ;;  %v602_v27 = vmul.f32 %v1643_v1, %v344_v13  ;;  %1109 = vst [vmem:[%s1677_s24 + $0x3f0] sm:$0xff] %v853_v19  ;;  %v855_v31 = vadd.f32 %v1648_v5, %v597_v20  ;;  %v365_v16 = vld [vmem:[%s1636_s13 + $0x4d0] sm:$0xff] }
  0x97   : > { %v856_v32 = vadd.f32 %v1648_v5, %v598_v21  ;;  %v857_v33 = vadd.f32 %v1648_v5, %v599_v22  ;;  %v603_v34 = vmul.f32 %v1643_v1, %v345_v18  ;;  %1110 = vst [vmem:[%s1677_s24 + $0x3f8] sm:$0xff] %v854_v24  ;;  %v858_v38 = vadd.f32 %v1648_v5, %v600_v25  ;;  %v366_v21 = vld [vmem:[%s1636_s13 + $0x4d8] sm:$0xff]  ;;  %v367_v22 = vld [vmem:[%s1636_s13 + $0x4e0] sm:$0xff] }
  0x98   : > { %v859_v39 = vadd.f32 %v1648_v5, %v601_v26  ;;  %v860_v40 = vadd.f32 %v1648_v5, %v602_v27  ;;  %v604_v41 = vmul.f32 %v1643_v1, %v346_v23  ;;  %1111 = vst [vmem:[%s1677_s24 + $0x400] sm:$0xff] %v855_v31  ;;  %v605_v44 = vmul.f32 %v1643_v1, %v347_v28  ;;  %v368_v23 = vld [vmem:[%s1636_s13 + $0x4e8] sm:$0xff]  ;;  %v369_v28 = vld [vmem:[%s1636_s13 + $0x4f0] sm:$0xff] }
  0x99   : > { %1112 = vst [vmem:[%s1677_s24 + $0x408] sm:$0xff] %v856_v32  ;;  %1113 = vst [vmem:[%s1677_s24 + $0x410] sm:$0xff] %v857_v33  ;;  %v861_v43 = vadd.f32 %v1648_v5, %v603_v34  ;;  %v606_v45 = vmul.f32 %v1643_v1, %v348_v29  ;;  %v607_v46 = vmul.f32 %v1643_v1, %v349_v30  ;;  %v370_v33 = vld [vmem:[%s1636_s13 + $0x4f8] sm:$0xff] }
  0x9a   : > { %1114 = vst [vmem:[%s1677_s24 + $0x418] sm:$0xff] %v858_v38  ;;  %1115 = vst [vmem:[%s1677_s24 + $0x420] sm:$0xff] %v859_v39  ;;  %v862_v48 = vadd.f32 %v1648_v5, %v604_v41  ;;  %v608_v49 = vmul.f32 %v1643_v1, %v350_v35  ;;  %v609_v50 = vmul.f32 %v1643_v1, %v351_v36  ;;  %v371_v38 = vld [vmem:[%s1636_s13 + $0x500] sm:$0xff]  ;;  %v372_v39 = vld [vmem:[%s1636_s13 + $0x508] sm:$0xff] }
  0x9b   : > { %1116 = vst [vmem:[%s1677_s24 + $0x428] sm:$0xff] %v860_v40  ;;  %v610_v51 = vmul.f32 %v1643_v1, %v352_v37  ;;  %1117 = vst [vmem:[%s1677_s24 + $0x430] sm:$0xff] %v861_v43  ;;  %v863_v55 = vadd.f32 %v1648_v5, %v605_v44  ;;  %v864_v56 = vadd.f32 %v1648_v5, %v606_v45  ;;  %v373_v40 = vld [vmem:[%s1636_s13 + $0x510] sm:$0xff]  ;;  %v374_v45 = vld [vmem:[%s1636_s13 + $0x518] sm:$0xff] }
  0x9c   : > { %v865_v57 = vadd.f32 %v1648_v5, %v607_v46  ;;  %v611_v58 = vmul.f32 %v1643_v1, %v353_v42  ;;  %1118 = vst [vmem:[%s1677_s24 + $0x438] sm:$0xff] %v862_v48  ;;  %v866_v62 = vadd.f32 %v1648_v5, %v608_v49  ;;  %v867_v63 = vadd.f32 %v1648_v5, %v609_v50  ;;  %v375_v46 = vld [vmem:[%s1636_s13 + $0x520] sm:$0xff] }
  0x9d   : > { %v868_v0 = vadd.f32 %v1648_v5, %v610_v51  ;;  %v612_v2 = vmul.f32 %v1643_v1, %v354_v47  ;;  %1119 = vst [vmem:[%s1677_s24 + $0x440] sm:$0xff] %v863_v55  ;;  %1120 = vst [vmem:[%s1677_s24 + $0x448] sm:$0xff] %v864_v56  ;;  %v613_v6 = vmul.f32 %v1643_v1, %v355_v52  ;;  %v376_v47 = vld [vmem:[%s1636_s13 + $0x528] sm:$0xff]  ;;  %v377_v52 = vld [vmem:[%s1636_s13 + $0x530] sm:$0xff] }
  0x9e   : > { %1121 = vst [vmem:[%s1677_s24 + $0x450] sm:$0xff] %v865_v57  ;;  %v869_v4 = vadd.f32 %v1648_v5, %v611_v58  ;;  %v614_v7 = vmul.f32 %v1643_v1, %v356_v53  ;;  %v615_v8 = vmul.f32 %v1643_v1, %v357_v54  ;;  %1122 = vst [vmem:[%s1677_s24 + $0x458] sm:$0xff] %v866_v62  ;;  %v378_v57 = vld [vmem:[%s1636_s13 + $0x538] sm:$0xff]  ;;  %v379_v62 = vld [vmem:[%s1636_s13 + $0x540] sm:$0xff] }
  0x9f   : > { %1123 = vst [vmem:[%s1677_s24 + $0x460] sm:$0xff] %v867_v63  ;;  %1124 = vst [vmem:[%s1677_s24 + $0x468] sm:$0xff] %v868_v0  ;;  %v870_v10 = vadd.f32 %v1648_v5, %v612_v2  ;;  %v616_v11 = vmul.f32 %v1643_v1, %v358_v59  ;;  %v617_v12 = vmul.f32 %v1643_v1, %v359_v60  ;;  %v380_v63 = vld [vmem:[%s1636_s13 + $0x548] sm:$0xff]  ;;  %v381_v0 = vld [vmem:[%s1636_s13 + $0x550] sm:$0xff] }
  0xa0   : > { %v618_v13 = vmul.f32 %v1643_v1, %v360_v61  ;;  %1125 = vst [vmem:[%s1677_s24 + $0x470] sm:$0xff] %v869_v4  ;;  %v871_v17 = vadd.f32 %v1648_v5, %v613_v6  ;;  %v872_v18 = vadd.f32 %v1648_v5, %v614_v7  ;;  %v873_v19 = vadd.f32 %v1648_v5, %v615_v8  ;;  %v382_v7 = vld [vmem:[%s1636_s13 + $0x558] sm:$0xff]  ;;  %v383_v8 = vld [vmem:[%s1636_s13 + $0x560] sm:$0xff] }
  0xa1   : > { %v619_v20 = vmul.f32 %v1643_v1, %v361_v3  ;;  %1126 = vst [vmem:[%s1677_s24 + $0x478] sm:$0xff] %v870_v10  ;;  %v874_v24 = vadd.f32 %v1648_v5, %v616_v11  ;;  %v875_v25 = vadd.f32 %v1648_v5, %v617_v12  ;;  %v620_v27 = vmul.f32 %v1643_v1, %v362_v9  ;;  %v384_v9 = vld [vmem:[%s1636_s13 + $0x568] sm:$0xff] }
  0xa2   : > { %v876_v26 = vadd.f32 %v1648_v5, %v618_v13  ;;  %1127 = vst [vmem:[%s1677_s24 + $0x480] sm:$0xff] %v871_v17  ;;  %1128 = vst [vmem:[%s1677_s24 + $0x488] sm:$0xff] %v872_v18  ;;  %v621_v30 = vmul.f32 %v1643_v1, %v363_v14  ;;  %v622_v31 = vmul.f32 %v1643_v1, %v364_v15  ;;  %v385_v14 = vld [vmem:[%s1636_s13 + $0x570] sm:$0xff] }
  0xa3   : > { %1129 = vst [vmem:[%s1677_s24 + $0x490] sm:$0xff] %v873_v19  ;;  %v877_v29 = vadd.f32 %v1648_v5, %v619_v20  ;;  %v623_v32 = vmul.f32 %v1643_v1, %v365_v16  ;;  %1130 = vst [vmem:[%s1677_s24 + $0x498] sm:$0xff] %v874_v24  ;;  %v878_v34 = vadd.f32 %v1648_v5, %v620_v27  ;;  %v386_v19 = vld [vmem:[%s1636_s13 + $0x578] sm:$0xff]  ;;  %v387_v24 = vld [vmem:[%s1636_s13 + $0x580] sm:$0xff] }
  0xa4   : > { %1131 = vst [vmem:[%s1677_s24 + $0x4a0] sm:$0xff] %v875_v25  ;;  %1132 = vst [vmem:[%s1677_s24 + $0x4a8] sm:$0xff] %v876_v26  ;;  %v624_v35 = vmul.f32 %v1643_v1, %v366_v21  ;;  %v625_v36 = vmul.f32 %v1643_v1, %v367_v22  ;;  %v626_v37 = vmul.f32 %v1643_v1, %v368_v23  ;;  %v388_v25 = vld [vmem:[%s1636_s13 + $0x588] sm:$0xff]  ;;  %v389_v26 = vld [vmem:[%s1636_s13 + $0x590] sm:$0xff] }
  0xa5   : > { %1133 = vst [vmem:[%s1677_s24 + $0x4b0] sm:$0xff] %v877_v29  ;;  %v879_v41 = vadd.f32 %v1648_v5, %v621_v30  ;;  %v880_v42 = vadd.f32 %v1648_v5, %v622_v31  ;;  %v881_v43 = vadd.f32 %v1648_v5, %v623_v32  ;;  %v627_v44 = vmul.f32 %v1643_v1, %v369_v28  ;;  %v390_v31 = vld [vmem:[%s1636_s13 + $0x598] sm:$0xff]  ;;  %v391_v32 = vld [vmem:[%s1636_s13 + $0x5a0] sm:$0xff] }
  0xa6   : > { %1134 = vst [vmem:[%s1677_s24 + $0x4b8] sm:$0xff] %v878_v34  ;;  %v882_v48 = vadd.f32 %v1648_v5, %v624_v35  ;;  %v883_v49 = vadd.f32 %v1648_v5, %v625_v36  ;;  %v884_v50 = vadd.f32 %v1648_v5, %v626_v37  ;;  %v628_v51 = vmul.f32 %v1643_v1, %v370_v33  ;;  %v392_v33 = vld [vmem:[%s1636_s13 + $0x5a8] sm:$0xff] }
  0xa7   : > { %1135 = vst [vmem:[%s1677_s24 + $0x4c0] sm:$0xff] %v879_v41  ;;  %1136 = vst [vmem:[%s1677_s24 + $0x4c8] sm:$0xff] %v880_v42  ;;  %v885_v53 = vadd.f32 %v1648_v5, %v627_v44  ;;  %v629_v54 = vmul.f32 %v1643_v1, %v371_v38  ;;  %v630_v55 = vmul.f32 %v1643_v1, %v372_v39  ;;  %v393_v38 = vld [vmem:[%s1636_s13 + $0x5b0] sm:$0xff] }
  0xa8   : > { %1137 = vst [vmem:[%s1677_s24 + $0x4d0] sm:$0xff] %v881_v43  ;;  %v631_v56 = vmul.f32 %v1643_v1, %v373_v40  ;;  %1138 = vst [vmem:[%s1677_s24 + $0x4d8] sm:$0xff] %v882_v48  ;;  %v886_v58 = vadd.f32 %v1648_v5, %v628_v51  ;;  %v632_v59 = vmul.f32 %v1643_v1, %v374_v45  ;;  %v394_v43 = vld [vmem:[%s1636_s13 + $0x5b8] sm:$0xff]  ;;  %v395_v48 = vld [vmem:[%s1636_s13 + $0x5c0] sm:$0xff] }
  0xa9   : > { %1139 = vst [vmem:[%s1677_s24 + $0x4e0] sm:$0xff] %v883_v49  ;;  %1140 = vst [vmem:[%s1677_s24 + $0x4e8] sm:$0xff] %v884_v50  ;;  %v633_v60 = vmul.f32 %v1643_v1, %v375_v46  ;;  %v634_v61 = vmul.f32 %v1643_v1, %v376_v47  ;;  %v887_v2 = vadd.f32 %v1648_v5, %v629_v54  ;;  %v396_v49 = vld [vmem:[%s1636_s13 + $0x5c8] sm:$0xff]  ;;  %v397_v50 = vld [vmem:[%s1636_s13 + $0x5d0] sm:$0xff] }
  0xaa   : > { %1141 = vst [vmem:[%s1677_s24 + $0x4f0] sm:$0xff] %v885_v53  ;;  %v888_v3 = vadd.f32 %v1648_v5, %v630_v55  ;;  %v889_v4 = vadd.f32 %v1648_v5, %v631_v56  ;;  %v635_v6 = vmul.f32 %v1643_v1, %v377_v52  ;;  %1142 = vst [vmem:[%s1677_s24 + $0x4f8] sm:$0xff] %v886_v58  ;;  %v398_v55 = vld [vmem:[%s1636_s13 + $0x5d8] sm:$0xff]  ;;  %v399_v56 = vld [vmem:[%s1636_s13 + $0x5e0] sm:$0xff] }
  0xab   : > { %v890_v10 = vadd.f32 %v1648_v5, %v632_v59  ;;  %v891_v11 = vadd.f32 %v1648_v5, %v633_v60  ;;  %v892_v12 = vadd.f32 %v1648_v5, %v634_v61  ;;  %v636_v13 = vmul.f32 %v1643_v1, %v378_v57  ;;  %1143 = vst [vmem:[%s1677_s24 + $0x500] sm:$0xff] %v887_v2  ;;  %v400_v57 = vld [vmem:[%s1636_s13 + $0x5e8] sm:$0xff] }
  0xac   : > { %1144 = vst [vmem:[%s1677_s24 + $0x508] sm:$0xff] %v888_v3  ;;  %1145 = vst [vmem:[%s1677_s24 + $0x510] sm:$0xff] %v889_v4  ;;  %v893_v15 = vadd.f32 %v1648_v5, %v635_v6  ;;  %v637_v16 = vmul.f32 %v1643_v1, %v379_v62  ;;  %v638_v17 = vmul.f32 %v1643_v1, %v380_v63  ;;  %v401_v62 = vld [vmem:[%s1636_s13 + $0x5f0] sm:$0xff]  ;;  %v402_v4 = vld [vmem:[%s1636_s13 + $0x5f8] sm:$0xff] }
  0xad   : > { %v639_v18 = vmul.f32 %v1643_v1, %v381_v0  ;;  %1146 = vst [vmem:[%s1677_s24 + $0x518] sm:$0xff] %v890_v10  ;;  %1147 = vst [vmem:[%s1677_s24 + $0x520] sm:$0xff] %v891_v11  ;;  %v894_v20 = vadd.f32 %v1648_v5, %v636_v13  ;;  %v640_v21 = vmul.f32 %v1643_v1, %v382_v7  ;;  %v403_v10 = vld [vmem:[%s1636_s13 + $0x600] sm:$0xff]  ;;  %v404_v11 = vld [vmem:[%s1636_s13 + $0x608] sm:$0xff] }
  0xae   : > { %1148 = vst [vmem:[%s1677_s24 + $0x528] sm:$0xff] %v892_v12  ;;  %v641_v22 = vmul.f32 %v1643_v1, %v383_v8  ;;  %v642_v23 = vmul.f32 %v1643_v1, %v384_v9  ;;  %1149 = vst [vmem:[%s1677_s24 + $0x530] sm:$0xff] %v893_v15  ;;  %v895_v27 = vadd.f32 %v1648_v5, %v637_v16  ;;  %v405_v12 = vld [vmem:[%s1636_s13 + $0x610] sm:$0xff] }
  0xaf   : > { %v896_v28 = vadd.f32 %v1648_v5, %v638_v17  ;;  %v897_v29 = vadd.f32 %v1648_v5, %v639_v18  ;;  %v643_v30 = vmul.f32 %v1643_v1, %v385_v14  ;;  %1150 = vst [vmem:[%s1677_s24 + $0x538] sm:$0xff] %v894_v20  ;;  %v898_v34 = vadd.f32 %v1648_v5, %v640_v21  ;;  %v406_v17 = vld [vmem:[%s1636_s13 + $0x618] sm:$0xff]  ;;  %v407_v18 = vld [vmem:[%s1636_s13 + $0x620] sm:$0xff] }
  0xb0   : > { %v899_v35 = vadd.f32 %v1648_v5, %v641_v22  ;;  %v900_v36 = vadd.f32 %v1648_v5, %v642_v23  ;;  %v644_v37 = vmul.f32 %v1643_v1, %v386_v19  ;;  %1151 = vst [vmem:[%s1677_s24 + $0x540] sm:$0xff] %v895_v27  ;;  %v645_v40 = vmul.f32 %v1643_v1, %v387_v24  ;;  %v408_v19 = vld [vmem:[%s1636_s13 + $0x628] sm:$0xff]  ;;  %v409_v24 = vld [vmem:[%s1636_s13 + $0x630] sm:$0xff] }
  0xb1   : > { %1152 = vst [vmem:[%s1677_s24 + $0x548] sm:$0xff] %v896_v28  ;;  %1153 = vst [vmem:[%s1677_s24 + $0x550] sm:$0xff] %v897_v29  ;;  %v901_v39 = vadd.f32 %v1648_v5, %v643_v30  ;;  %v646_v41 = vmul.f32 %v1643_v1, %v388_v25  ;;  %v647_v42 = vmul.f32 %v1643_v1, %v389_v26  ;;  %v410_v29 = vld [vmem:[%s1636_s13 + $0x638] sm:$0xff] }
  0xb2   : > { %1154 = vst [vmem:[%s1677_s24 + $0x558] sm:$0xff] %v898_v34  ;;  %1155 = vst [vmem:[%s1677_s24 + $0x560] sm:$0xff] %v899_v35  ;;  %v902_v44 = vadd.f32 %v1648_v5, %v644_v37  ;;  %v648_v45 = vmul.f32 %v1643_v1, %v390_v31  ;;  %v649_v46 = vmul.f32 %v1643_v1, %v391_v32  ;;  %v411_v34 = vld [vmem:[%s1636_s13 + $0x640] sm:$0xff]  ;;  %v412_v35 = vld [vmem:[%s1636_s13 + $0x648] sm:$0xff] }
  0xb3   : > { %1156 = vst [vmem:[%s1677_s24 + $0x568] sm:$0xff] %v900_v36  ;;  %v650_v47 = vmul.f32 %v1643_v1, %v392_v33  ;;  %1157 = vst [vmem:[%s1677_s24 + $0x570] sm:$0xff] %v901_v39  ;;  %v903_v51 = vadd.f32 %v1648_v5, %v645_v40  ;;  %v904_v52 = vadd.f32 %v1648_v5, %v646_v41  ;;  %v413_v36 = vld [vmem:[%s1636_s13 + $0x650] sm:$0xff]  ;;  %v414_v41 = vld [vmem:[%s1636_s13 + $0x658] sm:$0xff] }
  0xb4   : > { %v905_v53 = vadd.f32 %v1648_v5, %v647_v42  ;;  %v651_v54 = vmul.f32 %v1643_v1, %v393_v38  ;;  %1158 = vst [vmem:[%s1677_s24 + $0x578] sm:$0xff] %v902_v44  ;;  %v906_v58 = vadd.f32 %v1648_v5, %v648_v45  ;;  %v907_v59 = vadd.f32 %v1648_v5, %v649_v46  ;;  %v415_v42 = vld [vmem:[%s1636_s13 + $0x660] sm:$0xff] }
  0xb5   : > { %v908_v60 = vadd.f32 %v1648_v5, %v650_v47  ;;  %v652_v61 = vmul.f32 %v1643_v1, %v394_v43  ;;  %1159 = vst [vmem:[%s1677_s24 + $0x580] sm:$0xff] %v903_v51  ;;  %1160 = vst [vmem:[%s1677_s24 + $0x588] sm:$0xff] %v904_v52  ;;  %v653_v0 = vmul.f32 %v1643_v1, %v395_v48  ;;  %v416_v43 = vld [vmem:[%s1636_s13 + $0x668] sm:$0xff]  ;;  %v417_v48 = vld [vmem:[%s1636_s13 + $0x670] sm:$0xff] }
  0xb6   : > { %1161 = vst [vmem:[%s1677_s24 + $0x590] sm:$0xff] %v905_v53  ;;  %v909_v63 = vadd.f32 %v1648_v5, %v651_v54  ;;  %v654_v2 = vmul.f32 %v1643_v1, %v396_v49  ;;  %v655_v3 = vmul.f32 %v1643_v1, %v397_v50  ;;  %1162 = vst [vmem:[%s1677_s24 + $0x598] sm:$0xff] %v906_v58  ;;  %v418_v53 = vld [vmem:[%s1636_s13 + $0x678] sm:$0xff]  ;;  %v419_v58 = vld [vmem:[%s1636_s13 + $0x680] sm:$0xff] }
  0xb7   : > { %1163 = vst [vmem:[%s1677_s24 + $0x5a0] sm:$0xff] %v907_v59  ;;  %1164 = vst [vmem:[%s1677_s24 + $0x5a8] sm:$0xff] %v908_v60  ;;  %v910_v6 = vadd.f32 %v1648_v5, %v652_v61  ;;  %v656_v7 = vmul.f32 %v1643_v1, %v398_v55  ;;  %v657_v8 = vmul.f32 %v1643_v1, %v399_v56  ;;  %v420_v59 = vld [vmem:[%s1636_s13 + $0x688] sm:$0xff]  ;;  %v421_v60 = vld [vmem:[%s1636_s13 + $0x690] sm:$0xff] }
  0xb8   : > { %v658_v9 = vmul.f32 %v1643_v1, %v400_v57  ;;  %1165 = vst [vmem:[%s1677_s24 + $0x5b0] sm:$0xff] %v909_v63  ;;  %v911_v13 = vadd.f32 %v1648_v5, %v653_v0  ;;  %v912_v14 = vadd.f32 %v1648_v5, %v654_v2  ;;  %v913_v15 = vadd.f32 %v1648_v5, %v655_v3  ;;  %v422_v2 = vld [vmem:[%s1636_s13 + $0x698] sm:$0xff]  ;;  %v423_v3 = vld [vmem:[%s1636_s13 + $0x6a0] sm:$0xff] }
  0xb9   : > { %v659_v16 = vmul.f32 %v1643_v1, %v401_v62  ;;  %1166 = vst [vmem:[%s1677_s24 + $0x5b8] sm:$0xff] %v910_v6  ;;  %v914_v20 = vadd.f32 %v1648_v5, %v656_v7  ;;  %v915_v21 = vadd.f32 %v1648_v5, %v657_v8  ;;  %v660_v23 = vmul.f32 %v1643_v1, %v402_v4  ;;  %v424_v4 = vld [vmem:[%s1636_s13 + $0x6a8] sm:$0xff] }
  0xba   : > { %v916_v22 = vadd.f32 %v1648_v5, %v658_v9  ;;  %1167 = vst [vmem:[%s1677_s24 + $0x5c0] sm:$0xff] %v911_v13  ;;  %1168 = vst [vmem:[%s1677_s24 + $0x5c8] sm:$0xff] %v912_v14  ;;  %v661_v26 = vmul.f32 %v1643_v1, %v403_v10  ;;  %v662_v27 = vmul.f32 %v1643_v1, %v404_v11  ;;  %v425_v10 = vld [vmem:[%s1636_s13 + $0x6b0] sm:$0xff] }
  0xbb   : > { %1169 = vst [vmem:[%s1677_s24 + $0x5d0] sm:$0xff] %v913_v15  ;;  %v917_v25 = vadd.f32 %v1648_v5, %v659_v16  ;;  %v663_v28 = vmul.f32 %v1643_v1, %v405_v12  ;;  %1170 = vst [vmem:[%s1677_s24 + $0x5d8] sm:$0xff] %v914_v20  ;;  %v918_v30 = vadd.f32 %v1648_v5, %v660_v23  ;;  %v426_v15 = vld [vmem:[%s1636_s13 + $0x6b8] sm:$0xff]  ;;  %v427_v20 = vld [vmem:[%s1636_s13 + $0x6c0] sm:$0xff] }
  0xbc   : > { %1171 = vst [vmem:[%s1677_s24 + $0x5e0] sm:$0xff] %v915_v21  ;;  %1172 = vst [vmem:[%s1677_s24 + $0x5e8] sm:$0xff] %v916_v22  ;;  %v664_v31 = vmul.f32 %v1643_v1, %v406_v17  ;;  %v665_v32 = vmul.f32 %v1643_v1, %v407_v18  ;;  %v666_v33 = vmul.f32 %v1643_v1, %v408_v19  ;;  %v428_v21 = vld [vmem:[%s1636_s13 + $0x6c8] sm:$0xff]  ;;  %v429_v22 = vld [vmem:[%s1636_s13 + $0x6d0] sm:$0xff] }
  0xbd   : > { %1173 = vst [vmem:[%s1677_s24 + $0x5f0] sm:$0xff] %v917_v25  ;;  %v919_v37 = vadd.f32 %v1648_v5, %v661_v26  ;;  %v920_v38 = vadd.f32 %v1648_v5, %v662_v27  ;;  %v921_v39 = vadd.f32 %v1648_v5, %v663_v28  ;;  %v667_v40 = vmul.f32 %v1643_v1, %v409_v24  ;;  %v430_v27 = vld [vmem:[%s1636_s13 + $0x6d8] sm:$0xff]  ;;  %v431_v28 = vld [vmem:[%s1636_s13 + $0x6e0] sm:$0xff] }
  0xbe   : > { %1174 = vst [vmem:[%s1677_s24 + $0x5f8] sm:$0xff] %v918_v30  ;;  %v922_v44 = vadd.f32 %v1648_v5, %v664_v31  ;;  %v923_v45 = vadd.f32 %v1648_v5, %v665_v32  ;;  %v924_v46 = vadd.f32 %v1648_v5, %v666_v33  ;;  %v668_v47 = vmul.f32 %v1643_v1, %v410_v29  ;;  %v432_v29 = vld [vmem:[%s1636_s13 + $0x6e8] sm:$0xff] }
  0xbf   : > { %1175 = vst [vmem:[%s1677_s24 + $0x600] sm:$0xff] %v919_v37  ;;  %1176 = vst [vmem:[%s1677_s24 + $0x608] sm:$0xff] %v920_v38  ;;  %v925_v49 = vadd.f32 %v1648_v5, %v667_v40  ;;  %v669_v50 = vmul.f32 %v1643_v1, %v411_v34  ;;  %v670_v51 = vmul.f32 %v1643_v1, %v412_v35  ;;  %v433_v34 = vld [vmem:[%s1636_s13 + $0x6f0] sm:$0xff] }
  0xc0   : > { %1177 = vst [vmem:[%s1677_s24 + $0x610] sm:$0xff] %v921_v39  ;;  %v671_v52 = vmul.f32 %v1643_v1, %v413_v36  ;;  %1178 = vst [vmem:[%s1677_s24 + $0x618] sm:$0xff] %v922_v44  ;;  %v926_v54 = vadd.f32 %v1648_v5, %v668_v47  ;;  %v672_v55 = vmul.f32 %v1643_v1, %v414_v41  ;;  %v434_v39 = vld [vmem:[%s1636_s13 + $0x6f8] sm:$0xff]  ;;  %v435_v44 = vld [vmem:[%s1636_s13 + $0x700] sm:$0xff] }
  0xc1   : > { %1179 = vst [vmem:[%s1677_s24 + $0x620] sm:$0xff] %v923_v45  ;;  %1180 = vst [vmem:[%s1677_s24 + $0x628] sm:$0xff] %v924_v46  ;;  %v673_v56 = vmul.f32 %v1643_v1, %v415_v42  ;;  %v674_v57 = vmul.f32 %v1643_v1, %v416_v43  ;;  %v927_v61 = vadd.f32 %v1648_v5, %v669_v50  ;;  %v436_v45 = vld [vmem:[%s1636_s13 + $0x708] sm:$0xff]  ;;  %v437_v46 = vld [vmem:[%s1636_s13 + $0x710] sm:$0xff] }
  0xc2   : > { %1181 = vst [vmem:[%s1677_s24 + $0x630] sm:$0xff] %v925_v49  ;;  %v928_v62 = vadd.f32 %v1648_v5, %v670_v51  ;;  %v929_v63 = vadd.f32 %v1648_v5, %v671_v52  ;;  %v675_v0 = vmul.f32 %v1643_v1, %v417_v48  ;;  %1182 = vst [vmem:[%s1677_s24 + $0x638] sm:$0xff] %v926_v54  ;;  %v438_v51 = vld [vmem:[%s1636_s13 + $0x718] sm:$0xff]  ;;  %v439_v52 = vld [vmem:[%s1636_s13 + $0x720] sm:$0xff] }
  0xc3   : > { %v930_v6 = vadd.f32 %v1648_v5, %v672_v55  ;;  %v931_v7 = vadd.f32 %v1648_v5, %v673_v56  ;;  %v932_v8 = vadd.f32 %v1648_v5, %v674_v57  ;;  %v676_v9 = vmul.f32 %v1643_v1, %v418_v53  ;;  %1183 = vst [vmem:[%s1677_s24 + $0x640] sm:$0xff] %v927_v61  ;;  %v440_v53 = vld [vmem:[%s1636_s13 + $0x728] sm:$0xff] }
  0xc4   : > { %1184 = vst [vmem:[%s1677_s24 + $0x648] sm:$0xff] %v928_v62  ;;  %1185 = vst [vmem:[%s1677_s24 + $0x650] sm:$0xff] %v929_v63  ;;  %v933_v11 = vadd.f32 %v1648_v5, %v675_v0  ;;  %v677_v12 = vmul.f32 %v1643_v1, %v419_v58  ;;  %v678_v13 = vmul.f32 %v1643_v1, %v420_v59  ;;  %v441_v58 = vld [vmem:[%s1636_s13 + $0x730] sm:$0xff]  ;;  %v442_v63 = vld [vmem:[%s1636_s13 + $0x738] sm:$0xff] }
  0xc5   : > { %v679_v14 = vmul.f32 %v1643_v1, %v421_v60  ;;  %1186 = vst [vmem:[%s1677_s24 + $0x658] sm:$0xff] %v930_v6  ;;  %1187 = vst [vmem:[%s1677_s24 + $0x660] sm:$0xff] %v931_v7  ;;  %v934_v16 = vadd.f32 %v1648_v5, %v676_v9  ;;  %v680_v17 = vmul.f32 %v1643_v1, %v422_v2  ;;  %v443_v6 = vld [vmem:[%s1636_s13 + $0x740] sm:$0xff]  ;;  %v444_v7 = vld [vmem:[%s1636_s13 + $0x748] sm:$0xff] }
  0xc6   : > { %1188 = vst [vmem:[%s1677_s24 + $0x668] sm:$0xff] %v932_v8  ;;  %v681_v18 = vmul.f32 %v1643_v1, %v423_v3  ;;  %v682_v19 = vmul.f32 %v1643_v1, %v424_v4  ;;  %1189 = vst [vmem:[%s1677_s24 + $0x670] sm:$0xff] %v933_v11  ;;  %v935_v23 = vadd.f32 %v1648_v5, %v677_v12  ;;  %v445_v8 = vld [vmem:[%s1636_s13 + $0x750] sm:$0xff] }
  0xc7   : > { %v936_v24 = vadd.f32 %v1648_v5, %v678_v13  ;;  %v937_v25 = vadd.f32 %v1648_v5, %v679_v14  ;;  %v683_v26 = vmul.f32 %v1643_v1, %v425_v10  ;;  %1190 = vst [vmem:[%s1677_s24 + $0x678] sm:$0xff] %v934_v16  ;;  %v938_v30 = vadd.f32 %v1648_v5, %v680_v17  ;;  %v446_v13 = vld [vmem:[%s1636_s13 + $0x758] sm:$0xff]  ;;  %v447_v14 = vld [vmem:[%s1636_s13 + $0x760] sm:$0xff] }
  0xc8   : > { %v939_v31 = vadd.f32 %v1648_v5, %v681_v18  ;;  %v940_v32 = vadd.f32 %v1648_v5, %v682_v19  ;;  %v684_v33 = vmul.f32 %v1643_v1, %v426_v15  ;;  %1191 = vst [vmem:[%s1677_s24 + $0x680] sm:$0xff] %v935_v23  ;;  %v685_v36 = vmul.f32 %v1643_v1, %v427_v20  ;;  %v448_v15 = vld [vmem:[%s1636_s13 + $0x768] sm:$0xff]  ;;  %v449_v20 = vld [vmem:[%s1636_s13 + $0x770] sm:$0xff] }
  0xc9   : > { %1192 = vst [vmem:[%s1677_s24 + $0x688] sm:$0xff] %v936_v24  ;;  %1193 = vst [vmem:[%s1677_s24 + $0x690] sm:$0xff] %v937_v25  ;;  %v941_v35 = vadd.f32 %v1648_v5, %v683_v26  ;;  %v686_v37 = vmul.f32 %v1643_v1, %v428_v21  ;;  %v687_v38 = vmul.f32 %v1643_v1, %v429_v22  ;;  %v450_v25 = vld [vmem:[%s1636_s13 + $0x778] sm:$0xff] }
  0xca   : > { %1194 = vst [vmem:[%s1677_s24 + $0x698] sm:$0xff] %v938_v30  ;;  %1195 = vst [vmem:[%s1677_s24 + $0x6a0] sm:$0xff] %v939_v31  ;;  %v942_v40 = vadd.f32 %v1648_v5, %v684_v33  ;;  %v688_v41 = vmul.f32 %v1643_v1, %v430_v27  ;;  %v689_v42 = vmul.f32 %v1643_v1, %v431_v28  ;;  %v451_v30 = vld [vmem:[%s1636_s13 + $0x780] sm:$0xff]  ;;  %v452_v31 = vld [vmem:[%s1636_s13 + $0x788] sm:$0xff] }
  0xcb   : > { %1196 = vst [vmem:[%s1677_s24 + $0x6a8] sm:$0xff] %v940_v32  ;;  %v690_v43 = vmul.f32 %v1643_v1, %v432_v29  ;;  %1197 = vst [vmem:[%s1677_s24 + $0x6b0] sm:$0xff] %v941_v35  ;;  %v943_v47 = vadd.f32 %v1648_v5, %v685_v36  ;;  %v944_v48 = vadd.f32 %v1648_v5, %v686_v37  ;;  %v453_v32 = vld [vmem:[%s1636_s13 + $0x790] sm:$0xff]  ;;  %v454_v37 = vld [vmem:[%s1636_s13 + $0x798] sm:$0xff] }
  0xcc   : > { %v945_v49 = vadd.f32 %v1648_v5, %v687_v38  ;;  %v691_v50 = vmul.f32 %v1643_v1, %v433_v34  ;;  %1198 = vst [vmem:[%s1677_s24 + $0x6b8] sm:$0xff] %v942_v40  ;;  %v946_v54 = vadd.f32 %v1648_v5, %v688_v41  ;;  %v947_v55 = vadd.f32 %v1648_v5, %v689_v42  ;;  %v455_v38 = vld [vmem:[%s1636_s13 + $0x7a0] sm:$0xff] }
  0xcd   : > { %v948_v56 = vadd.f32 %v1648_v5, %v690_v43  ;;  %v692_v57 = vmul.f32 %v1643_v1, %v434_v39  ;;  %1199 = vst [vmem:[%s1677_s24 + $0x6c0] sm:$0xff] %v943_v47  ;;  %1200 = vst [vmem:[%s1677_s24 + $0x6c8] sm:$0xff] %v944_v48  ;;  %v693_v60 = vmul.f32 %v1643_v1, %v435_v44  ;;  %v456_v39 = vld [vmem:[%s1636_s13 + $0x7a8] sm:$0xff]  ;;  %v457_v44 = vld [vmem:[%s1636_s13 + $0x7b0] sm:$0xff] }
  0xce   : > { %1201 = vst [vmem:[%s1677_s24 + $0x6d0] sm:$0xff] %v945_v49  ;;  %v949_v59 = vadd.f32 %v1648_v5, %v691_v50  ;;  %v694_v61 = vmul.f32 %v1643_v1, %v436_v45  ;;  %v695_v62 = vmul.f32 %v1643_v1, %v437_v46  ;;  %1202 = vst [vmem:[%s1677_s24 + $0x6d8] sm:$0xff] %v946_v54  ;;  %v458_v49 = vld [vmem:[%s1636_s13 + $0x7b8] sm:$0xff]  ;;  %v459_v54 = vld [vmem:[%s1636_s13 + $0x7c0] sm:$0xff] }
  0xcf   : > { %1203 = vst [vmem:[%s1677_s24 + $0x6e0] sm:$0xff] %v947_v55  ;;  %1204 = vst [vmem:[%s1677_s24 + $0x6e8] sm:$0xff] %v948_v56  ;;  %v950_v0 = vadd.f32 %v1648_v5, %v692_v57  ;;  %v696_v2 = vmul.f32 %v1643_v1, %v438_v51  ;;  %v697_v3 = vmul.f32 %v1643_v1, %v439_v52  ;;  %v460_v55 = vld [vmem:[%s1636_s13 + $0x7c8] sm:$0xff]  ;;  %v461_v56 = vld [vmem:[%s1636_s13 + $0x7d0] sm:$0xff] }
  0xd0   : > { %v698_v4 = vmul.f32 %v1643_v1, %v440_v53  ;;  %1205 = vst [vmem:[%s1677_s24 + $0x6f0] sm:$0xff] %v949_v59  ;;  %v951_v9 = vadd.f32 %v1648_v5, %v693_v60  ;;  %v952_v10 = vadd.f32 %v1648_v5, %v694_v61  ;;  %v953_v11 = vadd.f32 %v1648_v5, %v695_v62  ;;  %v462_v61 = vld [vmem:[%s1636_s13 + $0x7d8] sm:$0xff]  ;;  %v463_v62 = vld [vmem:[%s1636_s13 + $0x7e0] sm:$0xff] }
  0xd1   : > { %v699_v12 = vmul.f32 %v1643_v1, %v441_v58  ;;  %1206 = vst [vmem:[%s1677_s24 + $0x6f8] sm:$0xff] %v950_v0  ;;  %v954_v16 = vadd.f32 %v1648_v5, %v696_v2  ;;  %v955_v17 = vadd.f32 %v1648_v5, %v697_v3  ;;  %v700_v19 = vmul.f32 %v1643_v1, %v442_v63  ;;  %v464_v63 = vld [vmem:[%s1636_s13 + $0x7e8] sm:$0xff] }
  0xd2   : > { %v956_v18 = vadd.f32 %v1648_v5, %v698_v4  ;;  %1207 = vst [vmem:[%s1677_s24 + $0x700] sm:$0xff] %v951_v9  ;;  %1208 = vst [vmem:[%s1677_s24 + $0x708] sm:$0xff] %v952_v10  ;;  %v701_v22 = vmul.f32 %v1643_v1, %v443_v6  ;;  %v702_v23 = vmul.f32 %v1643_v1, %v444_v7  ;;  %v465_v6 = vld [vmem:[%s1636_s13 + $0x7f0] sm:$0xff] }
  0xd3   : > { %1209 = vst [vmem:[%s1677_s24 + $0x710] sm:$0xff] %v953_v11  ;;  %v957_v21 = vadd.f32 %v1648_v5, %v699_v12  ;;  %v703_v24 = vmul.f32 %v1643_v1, %v445_v8  ;;  %1210 = vst [vmem:[%s1677_s24 + $0x718] sm:$0xff] %v954_v16  ;;  %v958_v26 = vadd.f32 %v1648_v5, %v700_v19  ;;  %v466_v11 = vld [vmem:[%s1636_s13 + $0x7f8] sm:$0xff] }
  0xd4   : > { %1211 = vst [vmem:[%s1677_s24 + $0x720] sm:$0xff] %v955_v17  ;;  %1212 = vst [vmem:[%s1677_s24 + $0x728] sm:$0xff] %v956_v18  ;;  %v704_v27 = vmul.f32 %v1643_v1, %v446_v13  ;;  %v705_v28 = vmul.f32 %v1643_v1, %v447_v14  ;;  %v706_v29 = vmul.f32 %v1643_v1, %v448_v15 }
  0xd5   : > { %1213 = vst [vmem:[%s1677_s24 + $0x730] sm:$0xff] %v957_v21  ;;  %v959_v33 = vadd.f32 %v1648_v5, %v701_v22  ;;  %v960_v34 = vadd.f32 %v1648_v5, %v702_v23  ;;  %v961_v35 = vadd.f32 %v1648_v5, %v703_v24  ;;  %v707_v36 = vmul.f32 %v1643_v1, %v449_v20 }
  0xd6   : > { %1214 = vst [vmem:[%s1677_s24 + $0x738] sm:$0xff] %v958_v26  ;;  %v962_v40 = vadd.f32 %v1648_v5, %v704_v27  ;;  %v963_v41 = vadd.f32 %v1648_v5, %v705_v28  ;;  %v964_v42 = vadd.f32 %v1648_v5, %v706_v29  ;;  %v708_v43 = vmul.f32 %v1643_v1, %v450_v25 }
  0xd7   : > { %1215 = vst [vmem:[%s1677_s24 + $0x740] sm:$0xff] %v959_v33  ;;  %1216 = vst [vmem:[%s1677_s24 + $0x748] sm:$0xff] %v960_v34  ;;  %v965_v45 = vadd.f32 %v1648_v5, %v707_v36  ;;  %v709_v46 = vmul.f32 %v1643_v1, %v451_v30  ;;  %v710_v47 = vmul.f32 %v1643_v1, %v452_v31 }
  0xd8   : > { %1217 = vst [vmem:[%s1677_s24 + $0x750] sm:$0xff] %v961_v35  ;;  %v711_v48 = vmul.f32 %v1643_v1, %v453_v32  ;;  %1218 = vst [vmem:[%s1677_s24 + $0x758] sm:$0xff] %v962_v40  ;;  %v966_v50 = vadd.f32 %v1648_v5, %v708_v43  ;;  %v712_v51 = vmul.f32 %v1643_v1, %v454_v37 }
  0xd9   : > { %1219 = vst [vmem:[%s1677_s24 + $0x760] sm:$0xff] %v963_v41  ;;  %1220 = vst [vmem:[%s1677_s24 + $0x768] sm:$0xff] %v964_v42  ;;  %v713_v52 = vmul.f32 %v1643_v1, %v455_v38  ;;  %v714_v53 = vmul.f32 %v1643_v1, %v456_v39  ;;  %v967_v57 = vadd.f32 %v1648_v5, %v709_v46 }
  0xda   : > { %1221 = vst [vmem:[%s1677_s24 + $0x770] sm:$0xff] %v965_v45  ;;  %v968_v58 = vadd.f32 %v1648_v5, %v710_v47  ;;  %v969_v59 = vadd.f32 %v1648_v5, %v711_v48  ;;  %v715_v60 = vmul.f32 %v1643_v1, %v457_v44  ;;  %1222 = vst [vmem:[%s1677_s24 + $0x778] sm:$0xff] %v966_v50 }
  0xdb   : > { %v970_v0 = vadd.f32 %v1648_v5, %v712_v51  ;;  %v971_v2 = vadd.f32 %v1648_v5, %v713_v52  ;;  %v972_v3 = vadd.f32 %v1648_v5, %v714_v53  ;;  %v716_v4 = vmul.f32 %v1643_v1, %v458_v49  ;;  %1223 = vst [vmem:[%s1677_s24 + $0x780] sm:$0xff] %v967_v57 }
  0xdc   : > { %1224 = vst [vmem:[%s1677_s24 + $0x788] sm:$0xff] %v968_v58  ;;  %1225 = vst [vmem:[%s1677_s24 + $0x790] sm:$0xff] %v969_v59  ;;  %v973_v7 = vadd.f32 %v1648_v5, %v715_v60  ;;  %v717_v8 = vmul.f32 %v1643_v1, %v459_v54  ;;  %v718_v9 = vmul.f32 %v1643_v1, %v460_v55 }
  0xdd   : > { %v719_v10 = vmul.f32 %v1643_v1, %v461_v56  ;;  %1226 = vst [vmem:[%s1677_s24 + $0x798] sm:$0xff] %v970_v0  ;;  %1227 = vst [vmem:[%s1677_s24 + $0x7a0] sm:$0xff] %v971_v2  ;;  %v974_v12 = vadd.f32 %v1648_v5, %v716_v4  ;;  %v720_v13 = vmul.f32 %v1643_v1, %v462_v61 }
  0xde   : > { %1228 = vst [vmem:[%s1677_s24 + $0x7a8] sm:$0xff] %v972_v3  ;;  %v721_v14 = vmul.f32 %v1643_v1, %v463_v62  ;;  %v722_v15 = vmul.f32 %v1643_v1, %v464_v63  ;;  %1229 = vst [vmem:[%s1677_s24 + $0x7b0] sm:$0xff] %v973_v7  ;;  %v975_v16 = vadd.f32 %v1648_v5, %v717_v8 }
  0xdf   : > { %v976_v17 = vadd.f32 %v1648_v5, %v718_v9  ;;  %v977_v18 = vadd.f32 %v1648_v5, %v719_v10  ;;  %v723_v19 = vmul.f32 %v1643_v1, %v465_v6  ;;  %1230 = vst [vmem:[%s1677_s24 + $0x7b8] sm:$0xff] %v974_v12  ;;  %v978_v20 = vadd.f32 %v1648_v5, %v720_v13 }
  0xe0   : > { %v979_v21 = vadd.f32 %v1648_v5, %v721_v14  ;;  %v980_v22 = vadd.f32 %v1648_v5, %v722_v15  ;;  %v724_v23 = vmul.f32 %v1643_v1, %v466_v11  ;;  %1231 = vst [vmem:[%s1677_s24 + $0x7c0] sm:$0xff] %v975_v16  ;;  %1246 = sbr.rel (!%p1577_p9) target bundleno = 256 (0x100), region = 40 }
  0xe1   : > { %1232 = vst [vmem:[%s1677_s24 + $0x7c8] sm:$0xff] %v976_v17  ;;  %1233 = vst [vmem:[%s1677_s24 + $0x7d0] sm:$0xff] %v977_v18  ;;  %v981_v24 = vadd.f32 %v1648_v5, %v723_v19 }
  0xe2   : > { %1234 = vst [vmem:[%s1677_s24 + $0x7d8] sm:$0xff] %v978_v20  ;;  %1235 = vst [vmem:[%s1677_s24 + $0x7e0] sm:$0xff] %v979_v21  ;;  %v982_v25 = vadd.f32 %v1648_v5, %v724_v23 }
  0xe3   : > { %1236 = vst [vmem:[%s1677_s24 + $0x7e8] sm:$0xff] %v980_v22  ;;  %1237 = vst [vmem:[%s1677_s24 + $0x7f0] sm:$0xff] %v981_v24 }
  0xe4   : > { %1238 = vst [vmem:[%s1677_s24 + $0x7f8] sm:$0xff] %v982_v25 }
  0xe5   : > { %s2750_s14 = smov (!%p1249_p6, %s1248_s14), 32 }
  0xe6   : > { %s2678_s15 = sshll.u32 %s2750_s14, 10 }
  0xe7   : > { %s1254_s2 = ssub.s32 32768, %s2678_s15 }
  0xe8   : > { %1255 = vsyncadd %s1240_s11, %s1254_s2  ;;  %p1353_p10 = scmp.ne.s32.totalorder %s2678_s15, 0  ;;  %s1365_s25 = sshll.u32 %s1554_s1, 15 }
  0xe9   : > { %s2688_s27 = scalar_lea.hbm %s2738_s3, %s1365_s25  ;;  %s1261_s28 = sshll.u32 %s1677_s24, 4  ;;  %s2691_s28 = int_to_ptr.vmem [resolvable:$true] %s1261_s28 }
  0xea   : > { %s1435_s29 = scalar_lea.vmem %s2691_s28, %s2678_s15  ;;  %s1504_s30 = smov [#allocation7]  }
  0xeb   : > { %p1436_p9 = scmp.ne.s32.totalorder %s2691_s28, %s1435_s29  ;;  %s1439_s5 = sshll.u32 %s1504_s30, 4  ;;  %s1440_s5 = int_to_ptr.vmem [resolvable:$false] %s1439_s5 }
  0xec   : > { %s1441_s1 = scalar_lea.vmem %s1440_s5, 65536  ;;  %p1442_p8 = scmp.lt.s32.totalorder %s2691_s28, %s1440_s5 }
  0xed   : > { %p1437_p13 = pnand %p1436_p9, %p1353_p10  ;;  %p1443_p11 = scmp.lt.s32.totalorder %s1441_s1, %s1435_s29 }
  0xef   : > { %p1438_p7 = pneg %p1437_p13  ;;  %p1444_p12 = por %p1443_p11, %p1442_p8 }
  0xf1   : > { %p1445_p0 = pnand %p1444_p12, %p1438_p7 }
  0xf3   : > { %1448 = shalt.err (!%p1445_p0)
}
  0xf4   : > { %s1449_s7 = scalar_lea.hbm %s2688_s27, %s2678_s15  ;;  %s1453_s13 = scalar_lea.hbm %s2738_s3, 313344 }
  0xf5   : > { %p1450_p1 = scmp.ne.s32.totalorder %s2688_s27, %s1449_s7  ;;  %p1454_p4 = scmp.lt.s32.totalorder %s2688_s27, %s2738_s3 }
  0xf6   : > { %p1455_p5 = scmp.lt.s32.totalorder %s1453_s13, %s1449_s7 }
  0xf7   : > { %p1451_p3 = pnand %p1450_p1, %p1353_p10 }
  0xf8   : > { %p1456_p6 = por %p1455_p5, %p1454_p4 }
  0xf9   : > { %p1452_p2 = pneg %p1451_p3 }
  0xfb   : > { %p1457_p9 = pnand %p1456_p6, %p1452_p2 }
  0xfd   : > { %1460 = shalt.err (!%p1457_p9)
}
  0xfe   : > { %s1505_s24 = smov 1024   ;;  %s1506_s12 = smov 64  }
  0xff   : > { %1267 = dma.vmem_to_hbm [thread:$0]  (%p1353_p10), %s2691_s28, %s2678_s15, %s2688_s27, %s1240_s11, %s1505_s24, %s1505_s24, %s1506_s12  }
 0x100 PF: > { %p1372_p13 = scmp.ge.s32.totalorder %s1499_s19, 2  ;;  %s1276_s14 = sand.u32 1, %s1487_s16  }
 0x101   : > { %p2742_p7 = scmp.ne.s32.totalorder %s2741_s26, 0  ;;  %s1277_s2 = scalar_lea.sflag [#allocation6], %s1276_s14 }
 0x103   : > { %p1369_p8 = pnand %p1372_p13, %p2742_p7 }
 0x105   : > { %p1370_p11 = pneg %p1369_p8 }
 0x107   : > { %1482 = dma.done.wait (%p1370_p11), %s1277_s2, 32768  }
 0x108   : > { %1484 = vsyncadd (%p1370_p11), %s1277_s2, 4294934528  ;;  %p18_p12 = scmp.ge.s32.totalorder %s1558_s20, 12   ;;  %s2743_s16 = smov %s1491_s17 }
 0x109   : > { %s2744_s17 = smov %s1495_s18  ;;  %s2745_s18 = smov %s1570_s23 }
 0x10a   : > { %s2746_s19 = smov %s1558_s20  ;;  %20 = sbr.rel (!%p18_p12) target bundleno = 8 (0x8), region = 77 }
 0x10f   :  { %1282 = vsyncpa [#allocation5], 1 }
 0x110   :  { %1284 = vsyncpa [#allocation5 + $0x1], 1 }
 0x111   :  { %1285 = vsyncpa [#allocation6], 1 }
 0x112   :  { %1287 = vsyncpa [#allocation6 + $0x1], 1 }

</bundles_post_ra>
